<compile_context>
chip_gen: v6e
topology: v6e:2x2x1
jax: 0.10.0
libtpu: 0.0.40
codegen_flags: <defaults>
</compile_context>

<pallas_src>
import functools

import jax
import jax.numpy as jnp
import numpy as np
from jax.experimental import pallas as pl
from jax.experimental.pallas import tpu as pltpu

FEAT = 512   # resnet feature width: torch.flatten(resnet(x), 1) -> (N, 512)
PROJ = 128   # lin_project_1 / lin_project_2 width


# ---------------------------------------------------------------------------
# Fused kernel: synthetic backbone (1x1 conv + ReLU + GAP) + PIRL head
# ---------------------------------------------------------------------------
def _fused_kernel(non_linear, x_ref, wbb_ref, bbb_ref, w1_ref, b1_ref, *rest):
    # x_ref   : (TB, C, HW)  f32   (NCHW read directly, HW on lanes)
    # wbb_ref : (C, FEAT)    bf16    bbb_ref: (1, FEAT) f32
    # w1_ref  : (FEAT, PROJ) bf16    b1_ref : (1, PROJ) f32
    # [w2_ref : (PROJ, PROJ) bf16    b2_ref : (1, PROJ) f32]   (non_linear only)
    # o_ref   : (1, TB, PROJ) f32
    if non_linear:
        w2_ref, b2_ref, o_ref = rest
    else:
        (o_ref,) = rest

    tb, _, hw = x_ref.shape
    cdt = w1_ref.dtype                       # matmul compute dtype (bf16)
    wbb = wbb_ref[...]
    bbb = bbb_ref[...]
    inv_hw = 1.0 / float(hw)

    # --- synthetic backbone: per-pixel linear (1x1 conv) -> ReLU -> GAP ---
    # TODO(synk): for very large images (e.g. 224x224, many channels) tile HW
    # with a running-sum GAP accumulator to fit v5e's 16 MiB scoped-VMEM default.
    rows = []
    for b in range(tb):                      # static unroll, TB is small (<=8)
        xb = x_ref[b].T.astype(cdt)          # (HW, C): in-VMEM relayout only
        h = jnp.dot(xb, wbb, preferred_element_type=jnp.float32)   # (HW, FEAT)
        h = jnp.maximum(h + bbb, 0.0)                              # bias + ReLU
        rows.append(jnp.sum(h, axis=0, keepdims=True) * inv_hw)    # GAP (1,FEAT)
    feats = rows[0] if tb == 1 else jnp.concatenate(rows, axis=0)  # (TB, FEAT)

    # --- projection head: Linear(512->128) [+ ReLU + Linear(128->128)] ---
    z = jnp.dot(feats.astype(cdt), w1_ref[...],
                preferred_element_type=jnp.float32) + b1_ref[...]
    if non_linear:
        z = jnp.maximum(z, 0.0)
        z = jnp.dot(z.astype(cdt), w2_ref[...],
                    preferred_element_type=jnp.float32) + b2_ref[...]
    o_ref[0] = z.astype(o_ref.dtype)         # (TB, PROJ), lane-dense store


def _pick_tb(total, max_tb=8):
    """Images per grid step: largest divisor of `total` <= max_tb, preferring a
    grid of >= 2 steps so both v7x TensorCores get work."""
    divisors = [d for d in range(1, min(total, max_tb) + 1) if total % d == 0]
    multi = [d for d in divisors if total // d >= 2]
    return max(multi) if multi else max(divisors)


def pirl_forward(params, non_linear_head, i_batch, i_t_batch):
    n = i_batch.shape[0]
    # One fused call for both batches: halves launches + weight DMA warm-up.
    x = jnp.concatenate([i_batch, i_t_batch], axis=0)        # (2N, C, H, W)
    total, c, h, w = x.shape
    hw = h * w
    x = x.reshape(total, c, hw)                               # free (contiguous)

    tb = _pick_tb(total)
    grid = total // tb

    inputs = [x, params["w_bb"], params["b_bb"], params["w1"], params["b1"]]
    in_specs = [
        pl.BlockSpec((tb, c, hw), lambda i: (i, 0, 0)),       # NCHW, HW on lanes
        pl.BlockSpec((c, FEAT), lambda i: (0, 0)),
        pl.BlockSpec((1, FEAT), lambda i: (0, 0)),
        pl.BlockSpec((FEAT, PROJ), lambda i: (0, 0)),
        pl.BlockSpec((1, PROJ), lambda i: (0, 0)),
    ]
    if non_linear_head:                       # skip useless w2/b2 DMA otherwise
        inputs += [params["w2"], params["b2"]]
        in_specs += [pl.BlockSpec((PROJ, PROJ), lambda i: (0, 0)),
                     pl.BlockSpec((1, PROJ), lambda i: (0, 0))]

    out = pl.pallas_call(
        functools.partial(_fused_kernel, non_linear_head),
        out_shape=jax.ShapeDtypeStruct((grid, tb, PROJ), jnp.float32),
        grid_spec=pltpu.PrefetchScalarGridSpec(
            num_scalar_prefetch=0,
            grid=(grid,),
            in_specs=in_specs,
            out_specs=pl.BlockSpec((1, tb, PROJ), lambda i: (i, 0, 0)),
        ),
        compiler_params=pltpu.CompilerParams(
            dimension_semantics=("parallel",)),
    )(*inputs)

    out = out.reshape(total, PROJ)
    return out[:n], out[n:]


# ---------------------------------------------------------------------------
# Module wrapper (parameter setup = plain-JAX glue)
# ---------------------------------------------------------------------------
class PIRLResnetPallas:
    # TODO(synk): the reference module wraps an arbitrary `resnet_module`; a full
    # ResNet is out of scope, so a synthetic conv1x1+ReLU+global-avg-pool backbone
    # emitting the required (N, 512) flattened features stands in for it.

    def __init__(self, in_channels, non_linear_head=False, key=None,
                 param_dtype=jnp.bfloat16):
        if key is None:
            key = jax.random.PRNGKey(42)
        self.non_linear_head = non_linear_head
        ks = jax.random.split(key, 6)

        def uniform_init(k, shape, fan_in, dtype):
            bound = 1.0 / (fan_in ** 0.5)
            return jax.random.uniform(k, shape, jnp.float32,
                                      -bound, bound).astype(dtype)

        self.params = {
            # synthetic backbone: 1x1 conv over channels -> 512 features
            "w_bb": uniform_init(ks[0], (in_channels, FEAT), in_channels, param_dtype),
            "b_bb": uniform_init(ks[1], (1, FEAT), in_channels, jnp.float32),
            # lin_project_1: nn.Linear(512, 128)  (stored (in, out))
            "w1": uniform_init(ks[2], (FEAT, PROJ), FEAT, param_dtype),
            "b1": uniform_init(ks[3], (1, PROJ), FEAT, jnp.float32),
            # lin_project_2: nn.Linear(128, 128)  (only used when non_linear_head)
            "w2": uniform_init(ks[4], (PROJ, PROJ), PROJ, param_dtype),
            "b2": uniform_init(ks[5], (1, PROJ), PROJ, jnp.float32),
        }

    def __call__(self, i_batch, i_t_batch):
        return pirl_forward(self.params, self.non_linear_head, i_batch, i_t_batch)


# ---------------------------------------------------------------------------
# Plain-JAX reference (mirrors the kernel's bf16-matmul / f32-accum math)
# ---------------------------------------------------------------------------
def _reference_forward(params, non_linear_head, i_batch, i_t_batch):
    def backbone(x):
        n, c, h, w = x.shape
        xr = jnp.transpose(x, (0, 2, 3, 1)).reshape(n, h * w, c)
        hdn = jnp.einsum("npc,cf->npf", xr.astype(params["w_bb"].dtype),
                         params["w_bb"], preferred_element_type=jnp.float32)
        hdn = jnp.maximum(hdn + params["b_bb"], 0.0)
        return jnp.mean(hdn, axis=1)

    def head(f):
        z = jnp.dot(f.astype(params["w1"].dtype), params["w1"],
                    preferred_element_type=jnp.float32) + params["b1"]
        if non_linear_head:
            z = jnp.maximum(z, 0.0)
            z = jnp.dot(z.astype(params["w2"].dtype), params["w2"],
                        preferred_element_type=jnp.float32) + params["b2"]
        return z

    return head(backbone(i_batch)), head(backbone(i_t_batch))


if __name__ == "__main__":
    N, C, H, W = 2, 4, 16, 16
    k1, k2 = jax.random.split(jax.random.PRNGKey(0))
    i_batch = jax.random.normal(k1, (N, C, H, W), jnp.float32)      # NCHW
    i_t_batch = jax.random.normal(k2, (N, C, H, W), jnp.float32)    # NCHW

    for non_linear in (True, False):
        model = PIRLResnetPallas(in_channels=C, non_linear_head=non_linear,
                                 key=jax.random.PRNGKey(1234))
        vi, vi_t = model(i_batch, i_t_batch)
        jax.block_until_ready((vi, vi_t))

        assert vi.shape == (N, PROJ) and vi.dtype == jnp.float32
        assert vi_t.shape == (N, PROJ) and vi_t.dtype == jnp.float32

        ref_vi, ref_vi_t = _reference_forward(model.params, non_linear,
                                              i_batch, i_t_batch)
        np.testing.assert_allclose(np.asarray(vi), np.asarray(ref_vi),
                                   rtol=1e-2, atol=2e-3)
        np.testing.assert_allclose(np.asarray(vi_t), np.asarray(ref_vi_t),
                                   rtol=1e-2, atol=2e-3)

    print("KERNEL_OK")
</pallas_src>

<mosaic_0001>
module attributes {stable_mosaic.version = 11 : i64} {
  func.func @_fused_kernel(%arg0: i32, %arg1: memref<2x4x256xf32, #tpu.memory_space<vmem>>, %arg2: memref<4x512xbf16, #tpu.memory_space<vmem>>, %arg3: memref<1x512xf32, #tpu.memory_space<vmem>>, %arg4: memref<512x128xbf16, #tpu.memory_space<vmem>>, %arg5: memref<1x128xf32, #tpu.memory_space<vmem>>, %arg6: memref<128x128xbf16, #tpu.memory_space<vmem>>, %arg7: memref<1x128xf32, #tpu.memory_space<vmem>>, %arg8: memref<1x2x128xf32, #tpu.memory_space<vmem>>) attributes {dimension_semantics = [#tpu.dimension_semantics<parallel>], iteration_bounds = array<i64: 2>, scalar_prefetch = 0 : i64, scratch_operands = 0 : i64, tpu.core_type = #tpu.core_type<tc>, window_params = [{transform_indices = @transform_0, window_bounds = array<i64: 2, 4, 256>}, {pipeline_mode = #tpu.pipeline_mode<synchronous>, transform_indices = @transform_1, window_bounds = array<i64: 4, 512>}, {pipeline_mode = #tpu.pipeline_mode<synchronous>, transform_indices = @transform_2, window_bounds = array<i64: 1, 512>}, {pipeline_mode = #tpu.pipeline_mode<synchronous>, transform_indices = @transform_3, window_bounds = array<i64: 512, 128>}, {pipeline_mode = #tpu.pipeline_mode<synchronous>, transform_indices = @transform_4, window_bounds = array<i64: 1, 128>}, {pipeline_mode = #tpu.pipeline_mode<synchronous>, transform_indices = @transform_5, window_bounds = array<i64: 128, 128>}, {pipeline_mode = #tpu.pipeline_mode<synchronous>, transform_indices = @transform_6, window_bounds = array<i64: 1, 128>}, {transform_indices = @transform_7, window_bounds = array<i64: 1, 2, 128>}]} {
    %c0 = arith.constant 0 : index
    %c0_0 = arith.constant 0 : index
    %0 = vector.load %arg2[%c0, %c0_0] : memref<4x512xbf16, #tpu.memory_space<vmem>>, vector<4x512xbf16>
    %c0_1 = arith.constant 0 : index
    %c0_2 = arith.constant 0 : index
    %1 = vector.load %arg3[%c0_1, %c0_2] : memref<1x512xf32, #tpu.memory_space<vmem>>, vector<1x512xf32>
    %c0_3 = arith.constant 0 : index
    %c0_4 = arith.constant 0 : index
    %c0_5 = arith.constant 0 : index
    %2 = vector.load %arg1[%c0_3, %c0_4, %c0_5] : memref<2x4x256xf32, #tpu.memory_space<vmem>>, vector<1x4x256xf32>
    %3 = vector.shape_cast %2 : vector<1x4x256xf32> to vector<4x256xf32>
    %4 = tpu.transpose %3, [1, 0] : vector<4x256xf32> -> vector<256x4xf32>
    %5 = arith.truncf %4 : vector<256x4xf32> to vector<256x4xbf16>
    %cst = arith.constant dense<0.000000e+00> : vector<256x512xf32>
    %6 = tpu.matmul %5, %0, %cst {dimension_numbers = #tpu.dot_dimension_numbers<[1], [0], [0], [1], [0, 0, 1, 1], [], []>} : vector<256x4xbf16>, vector<4x512xbf16>, vector<256x512xf32> -> vector<256x512xf32>
    %7 = vector.broadcast %1 : vector<1x512xf32> to vector<256x512xf32>
    %8 = arith.addf %6, %7 : vector<256x512xf32>
    %cst_6 = arith.constant 0.000000e+00 : f32
    %9 = vector.broadcast %cst_6 : f32 to vector<256x512xf32>
    %10 = arith.maximumf %8, %9 : vector<256x512xf32>
    %cst_7 = arith.constant dense<0.000000e+00> : vector<512xf32>
    %11 = vector.multi_reduction <add>, %10, %cst_7 [0] : vector<256x512xf32> to vector<512xf32>
    %12 = vector.shape_cast %11 : vector<512xf32> to vector<1x512xf32>
    %cst_8 = arith.constant 3.906250e-03 : f32
    %13 = vector.broadcast %cst_8 : f32 to vector<1x512xf32>
    %14 = arith.mulf %12, %13 : vector<1x512xf32>
    %c1 = arith.constant 1 : index
    %c0_9 = arith.constant 0 : index
    %c0_10 = arith.constant 0 : index
    %15 = vector.load %arg1[%c1, %c0_9, %c0_10] : memref<2x4x256xf32, #tpu.memory_space<vmem>>, vector<1x4x256xf32>
    %16 = vector.shape_cast %15 : vector<1x4x256xf32> to vector<4x256xf32>
    %17 = tpu.transpose %16, [1, 0] : vector<4x256xf32> -> vector<256x4xf32>
    %18 = arith.truncf %17 : vector<256x4xf32> to vector<256x4xbf16>
    %cst_11 = arith.constant dense<0.000000e+00> : vector<256x512xf32>
    %19 = tpu.matmul %18, %0, %cst_11 {dimension_numbers = #tpu.dot_dimension_numbers<[1], [0], [0], [1], [0, 0, 1, 1], [], []>} : vector<256x4xbf16>, vector<4x512xbf16>, vector<256x512xf32> -> vector<256x512xf32>
    %20 = vector.broadcast %1 : vector<1x512xf32> to vector<256x512xf32>
    %21 = arith.addf %19, %20 : vector<256x512xf32>
    %cst_12 = arith.constant 0.000000e+00 : f32
    %22 = vector.broadcast %cst_12 : f32 to vector<256x512xf32>
    %23 = arith.maximumf %21, %22 : vector<256x512xf32>
    %cst_13 = arith.constant dense<0.000000e+00> : vector<512xf32>
    %24 = vector.multi_reduction <add>, %23, %cst_13 [0] : vector<256x512xf32> to vector<512xf32>
    %25 = vector.shape_cast %24 : vector<512xf32> to vector<1x512xf32>
    %cst_14 = arith.constant 3.906250e-03 : f32
    %26 = vector.broadcast %cst_14 : f32 to vector<1x512xf32>
    %27 = arith.mulf %25, %26 : vector<1x512xf32>
    %28 = tpu.concatenate %14, %27 in 0 : vector<1x512xf32>, vector<1x512xf32> -> vector<2x512xf32>
    %29 = arith.truncf %28 : vector<2x512xf32> to vector<2x512xbf16>
    %c0_15 = arith.constant 0 : index
    %c0_16 = arith.constant 0 : index
    %30 = vector.load %arg4[%c0_15, %c0_16] : memref<512x128xbf16, #tpu.memory_space<vmem>>, vector<512x128xbf16>
    %cst_17 = arith.constant dense<0.000000e+00> : vector<2x128xf32>
    %31 = tpu.matmul %29, %30, %cst_17 {dimension_numbers = #tpu.dot_dimension_numbers<[1], [0], [0], [1], [0, 0, 1, 1], [], []>} : vector<2x512xbf16>, vector<512x128xbf16>, vector<2x128xf32> -> vector<2x128xf32>
    %c0_18 = arith.constant 0 : index
    %c0_19 = arith.constant 0 : index
    %32 = vector.load %arg5[%c0_18, %c0_19] : memref<1x128xf32, #tpu.memory_space<vmem>>, vector<1x128xf32>
    %33 = vector.broadcast %32 : vector<1x128xf32> to vector<2x128xf32>
    %34 = arith.addf %31, %33 : vector<2x128xf32>
    %cst_20 = arith.constant 0.000000e+00 : f32
    %35 = vector.broadcast %cst_20 : f32 to vector<2x128xf32>
    %36 = arith.maximumf %34, %35 : vector<2x128xf32>
    %37 = arith.truncf %36 : vector<2x128xf32> to vector<2x128xbf16>
    %c0_21 = arith.constant 0 : index
    %c0_22 = arith.constant 0 : index
    %38 = vector.load %arg6[%c0_21, %c0_22] : memref<128x128xbf16, #tpu.memory_space<vmem>>, vector<128x128xbf16>
    %cst_23 = arith.constant dense<0.000000e+00> : vector<2x128xf32>
    %39 = tpu.matmul %37, %38, %cst_23 {dimension_numbers = #tpu.dot_dimension_numbers<[1], [0], [0], [1], [0, 0, 1, 1], [], []>} : vector<2x128xbf16>, vector<128x128xbf16>, vector<2x128xf32> -> vector<2x128xf32>
    %c0_24 = arith.constant 0 : index
    %c0_25 = arith.constant 0 : index
    %40 = vector.load %arg7[%c0_24, %c0_25] : memref<1x128xf32, #tpu.memory_space<vmem>>, vector<1x128xf32>
    %41 = vector.broadcast %40 : vector<1x128xf32> to vector<2x128xf32>
    %42 = arith.addf %39, %41 : vector<2x128xf32>
    %c0_26 = arith.constant 0 : index
    %c0_27 = arith.constant 0 : index
    %c0_28 = arith.constant 0 : index
    %43 = vector.load %arg8[%c0_26, %c0_27, %c0_28] : memref<1x2x128xf32, #tpu.memory_space<vmem>>, vector<1x2x128xf32>
    %44 = vector.shape_cast %43 : vector<1x2x128xf32> to vector<2x128xf32>
    %45 = vector.shape_cast %42 : vector<2x128xf32> to vector<1x2x128xf32>
    tpu.vector_store %arg8[%c0_26, %c0_27, %c0_28], %45 {strides = array<i32>} : memref<1x2x128xf32, #tpu.memory_space<vmem>>, vector<1x2x128xf32>,
    return
  }
  func.func @transform_0(%arg0: i32) -> (i32, i32, i32) {
    %c0_i32 = arith.constant 0 : i32
    %c0_i32_0 = arith.constant 0 : i32
    %c0_i32_1 = arith.constant 0 : i32
    return %arg0, %c0_i32, %c0_i32_0 : i32, i32, i32
  }
  func.func @transform_1(%arg0: i32) -> (i32, i32) {
    %c0_i32 = arith.constant 0 : i32
    %c0_i32_0 = arith.constant 0 : i32
    %c0_i32_1 = arith.constant 0 : i32
    return %c0_i32, %c0_i32_0 : i32, i32
  }
  func.func @transform_2(%arg0: i32) -> (i32, i32) {
    %c0_i32 = arith.constant 0 : i32
    %c0_i32_0 = arith.constant 0 : i32
    %c0_i32_1 = arith.constant 0 : i32
    return %c0_i32, %c0_i32_0 : i32, i32
  }
  func.func @transform_3(%arg0: i32) -> (i32, i32) {
    %c0_i32 = arith.constant 0 : i32
    %c0_i32_0 = arith.constant 0 : i32
    %c0_i32_1 = arith.constant 0 : i32
    return %c0_i32, %c0_i32_0 : i32, i32
  }
  func.func @transform_4(%arg0: i32) -> (i32, i32) {
    %c0_i32 = arith.constant 0 : i32
    %c0_i32_0 = arith.constant 0 : i32
    %c0_i32_1 = arith.constant 0 : i32
    return %c0_i32, %c0_i32_0 : i32, i32
  }
  func.func @transform_5(%arg0: i32) -> (i32, i32) {
    %c0_i32 = arith.constant 0 : i32
    %c0_i32_0 = arith.constant 0 : i32
    %c0_i32_1 = arith.constant 0 : i32
    return %c0_i32, %c0_i32_0 : i32, i32
  }
  func.func @transform_6(%arg0: i32) -> (i32, i32) {
    %c0_i32 = arith.constant 0 : i32
    %c0_i32_0 = arith.constant 0 : i32
    %c0_i32_1 = arith.constant 0 : i32
    return %c0_i32, %c0_i32_0 : i32, i32
  }
  func.func @transform_7(%arg0: i32) -> (i32, i32, i32) {
    %c0_i32 = arith.constant 0 : i32
    %c0_i32_0 = arith.constant 0 : i32
    %c0_i32_1 = arith.constant 0 : i32
    return %arg0, %c0_i32, %c0_i32_0 : i32, i32, i32
  }
}

</mosaic_0001>

<bundles_post_ra>
// kernel: tpu_custom_call.1
= control target key start
LH: loop header
LB: loop body
LE: loop exit
PB: predicated region body
PF: predicated region fallthrough
CT: control target
= control target key end

     0   :  { %s3939_s0 = inlined_call_operand.hbm [shape: f32[4,4,256], index: 0, kind: input, shape index: {}]   ;;  %s3940_s1 = inlined_call_operand.hbm [shape: bf16[4,512], index: 1, kind: input, shape index: {}]   ;;  %s3941_s2 = inlined_call_operand.hbm [shape: f32[1,512], index: 2, kind: input, shape index: {}]   ;;  %s3942_s3 = inlined_call_operand.hbm [shape: bf16[512,128], index: 3, kind: input, shape index: {}]   ;;  %s3943_s4 = inlined_call_operand.vmem [shape: f32[1,128], index: 4, kind: input, shape index: {}]   ;;  %s3944_s5 = inlined_call_operand.hbm [shape: bf16[128,128], index: 5, kind: input, shape index: {}]   ;;  %s3945_s6 = inlined_call_operand.vmem [shape: f32[1,128], index: 6, kind: input, shape index: {}]   ;;  %s3946_s7 = inlined_call_operand.hbm [shape: f32[2,2,128], index: 7, kind: output, shape index: {}]  }
   0x1   :  { %3951 = sst [smem:[#allocation16_spill]] %s3940_s1 }
   0x2   :  { %12 = vsyncpa [#allocation3], 0 }
   0x3   :  { %14 = vsyncpa [#allocation3 + $0x1], 0 }
   0x4   :  { %15 = vsyncpa [#allocation6], 0 }
   0x5   :  { %16 = vsyncpa [#allocation9], 0 }
   0x6   :  { %17 = vsyncpa [#allocation4], 0 }
   0x7   :  { %19 = vsyncpa [#allocation4 + $0x1], 0  ;;  %s3202_s24 = smov 0   ;;  %s3204_s25 = smov 0  }
   0x8   :  { %s3206_s26 = smov 0   ;;  %s3208_s27 = smov 0  }
   0x9 LB: > { %s3223_s28 = sadd.s32 4294967295, %s3146_s27   ;;  %s2594_s29 = sadd.s32 4294967294, %s3146_s27   ;;  %s3146_s27 = sphi %s3208_s27, %s3972_s27   ;;  %s3142_s26 = sphi %s3206_s26, %s3971_s26   ;;  %s3138_s25 = sphi %s3204_s25, %s3970_s25   ;;  %s3134_s24 = sphi %s3202_s24, %s3969_s24  }
   0xa   : > { %p45_p0 = scmp.ne.s32.totalorder %s3138_s25, %s3134_s24  ;;  %p3947_p1 = scmp.eq.s32.totalorder %s3223_s28, 0 }
   0xb   : > { %p201_p3 = scmp.eq.s32.totalorder %s2594_s29, 1  ;;  %p2595_p5 = scmp.ge.s32.totalorder %s3146_s27, 1 }
   0xc   : > { %p3232_p4 = por %p3947_p1, %p45_p0  ;;  %p208_p7 = scmp.lt.s32.totalorder %s3146_s27, 3 }
   0xd   : > { %p3237_p6 = por %p201_p3, %p45_p0  ;;  %s3148_s10 = smov [#allocation5]  }
   0xe   : > { %s3952_s30 = scalar_select %p3232_p4, 1, 0 }
   0xf   : > { %s3953_s8 = scalar_select %p3237_p6, 1, 0 }
  0x10   : > { %p3242_p8 = pnand %p2595_p5, %p208_p7  ;;  %s221_s11 = sshll.u32 %s3148_s10, 4  ;;  %s222_s11 = int_to_ptr.vmem [resolvable:$true] %s221_s11 }
  0x11   : > { %s3149_s12 = smov [#allocation8]   ;;  %s3150_s15 = smov [#allocation7]  }
  0x12   : > { %s3954_s9 = scalar_select %p3242_p8, 1, 0 }
  0x13   : > { %p2824_p10 = pneg %p3242_p8  ;;  %s242_s13 = sshll.u32 %s3149_s12, 4  ;;  %s243_s13 = int_to_ptr.vmem [resolvable:$true] %s242_s13 }
  0x14   : > { %s232_s16 = sshll.u32 %s3150_s15, 4  ;;  %s2953_s17 = scalar_lea.vmem %s222_s11, 128  ;;  %s233_s16 = int_to_ptr.vmem [resolvable:$true] %s232_s16 }
  0x15   : > { %p3251_p11 = pnand %p2824_p10, %p3947_p1  ;;  %p2954_p13 = scmp.ne.s32.totalorder %s222_s11, %s2953_s17 }
  0x16   : > { %p2961_p5 = scmp.lt.s32.totalorder %s222_s11, %s222_s11  ;;  %p2962_p7 = scmp.lt.s32.totalorder %s2953_s17, %s2953_s17 }
  0x17   : > { %p2944_p12 = pneg %p3251_p11 }
  0x18   : > { %p2963_p9 = por %p2962_p7, %p2961_p5 }
  0x19   : > { %p2956_p0 = pnand %p2954_p13, %p2944_p12 }
  0x1b   : > { %p2957_p3 = pneg %p2956_p0 }
  0x1d   : > { %p2964_p10 = pnand %p2963_p9, %p2957_p3 }
  0x1f   : > { %2967 = shalt.err (!%p2964_p10)
}
  0x20   : > { %s3956_s1 = sld [smem:[#allocation16_spill]]  ;;  %s2979_s20 = scalar_lea.vmem %s243_s13, 4096 }
  0x21   : > { %p2980_p1 = scmp.ne.s32.totalorder %s243_s13, %s2979_s20  ;;  %p2987_p13 = scmp.lt.s32.totalorder %s243_s13, %s243_s13 }
  0x22   : > { %p2988_p0 = scmp.lt.s32.totalorder %s2979_s20, %s2979_s20 }
  0x23   : > { %p2982_p2 = pnand %p2980_p1, %p2944_p12 }
  0x24   : > { %p2989_p4 = por %p2988_p0, %p2987_p13 }
  0x25   : > { %p2983_p6 = pneg %p2982_p2 }
  0x26   : > { %2827 = dma.hbm_to_vmem [thread:$0]  (!%p3251_p11), %s3956_s1, 128, %s222_s11, [#allocation6]  }
  0x27   : > { %p2990_p8 = pnand %p2989_p4, %p2983_p6 }
  0x29   : > { %2993 = shalt.err (!%p2990_p8)
}
  0x2a   : > { %s3151_s21 = smov 64   ;;  %s3152_s22 = smov 4  }
  0x2b   : > { %2833 = dma.hbm_to_vmem [thread:$0]  (!%p3251_p11), %s3942_s3, 4096, %s243_s13, [#allocation9], %s3151_s21, %s3151_s21, %s3152_s22  }
  0x2c   : > { %s3005_s10 = scalar_lea.vmem %s233_s16, 64  ;;  %p3013_p3 = scmp.lt.s32.totalorder %s233_s16, %s233_s16 }
  0x2d   : > { %p3006_p9 = scmp.ne.s32.totalorder %s233_s16, %s3005_s10  ;;  %p3014_p5 = scmp.lt.s32.totalorder %s3005_s10, %s3005_s10 }
  0x2f   : > { %p3008_p1 = pnand %p3006_p9, %p2944_p12  ;;  %p3015_p4 = por %p3014_p5, %p3013_p3 }
  0x31   : > { %p3009_p2 = pneg %p3008_p1 }
  0x33   : > { %p3016_p6 = pnand %p3015_p4, %p3009_p2 }
  0x35   : > { %3019 = shalt.err (!%p3016_p6)
}
  0x36   : > { %2830 = dma.hbm_to_vmem [thread:$0]  (!%p3251_p11), %s3941_s2, 64, %s233_s16, [#allocation6]  }
  0x37   : > { %s3153_s13 = smov [#allocation10]  }
  0x38   : > { %s258_s15 = sshll.u32 %s3153_s13, 4  ;;  %s259_s15 = int_to_ptr.vmem [resolvable:$true] %s258_s15 }
  0x39   : > { %s3031_s17 = scalar_lea.vmem %s259_s15, 1024  ;;  %p3039_p13 = scmp.lt.s32.totalorder %s259_s15, %s259_s15 }
  0x3a   : > { %p3032_p8 = scmp.ne.s32.totalorder %s259_s15, %s3031_s17  ;;  %p3040_p0 = scmp.lt.s32.totalorder %s3031_s17, %s3031_s17 }
  0x3c   : > { %p3034_p7 = pnand %p3032_p8, %p2944_p12  ;;  %p3041_p9 = por %p3040_p0, %p3039_p13 }
  0x3e   : > { %p3035_p10 = pneg %p3034_p7 }
  0x40   : > { %p3042_p1 = pnand %p3041_p9, %p3035_p10 }
  0x42   : > { %3045 = shalt.err (!%p3042_p1)
}
  0x43   : > { %2836 = dma.hbm_to_vmem [thread:$0]  (!%p3251_p11), %s3944_s5, 1024, %s259_s15, [#allocation9], %s3151_s21, %s3151_s21, %s3152_s22  }
  0x44   : > { %s3290_s16 = sadd.s32 1, %s3146_s27   ;;  %s32_s20 = sadd.s32 1, %s3142_s26 }
  0x45   : > { %s29_s14 = ssub.s32 %s3146_s27, %s3290_s16  ;;  %p39_p12 = scmp.ne.s32.totalorder %s3142_s26, %s3138_s25 }
  0x46   : > { %p30_p2 = scmp.eq.s32.totalorder %s29_s14, 0  ;;  %p40_p3 = scmp.eq.s32.totalorder %s3146_s27, 0 }
  0x47   : > { %p3957_p5 = scmp.eq.s32.totalorder %s3223_s28, 1  ;;  %p2849_p6 = scmp.lt.s32.totalorder %s3146_s27, 2 }
  0x48   : > { %s3306_s29 = scalar_select %p30_p2, %s3142_s26, %s32_s20  }
  0x49   : > { %p3300_p4 = por %p3957_p5, %p39_p12  ;;  %p41_p8 = por %p40_p3, %p39_p12 }
  0x4a   : > { %s275_s10 = sand.u32 1, %s3142_s26   ;;  %s2728_s21 = sshll.u32 %s3146_s27, 8 }
  0x4b   : > { %s3958_s23 = scalar_select %p3300_p4, 1, 0 }
  0x4c   : > { %s2601_s11 = sshll.u32 %s275_s10, 4  ;;  %s3313_s13 = scalar_lea.hbm %s3939_s0, %s2728_s21 }
  0x4d   : > { %s279_s15 = scalar_lea.vmem [#allocation2], %s2601_s11  ;;  %p3317_p11 = pnand %p2849_p6, %p41_p8 }
  0x4e   : > { %s287_s17 = sshll.u32 %s279_s15, 4  ;;  %s3321_s19 = scalar_lea.sflag [#allocation3], %s275_s10  ;;  %s3315_s17 = int_to_ptr.vmem [resolvable:$true] %s287_s17 }
  0x4f   : > { %s3046_s20 = scalar_lea.hbm %s3313_s13, 256  ;;  %p3048_p10 = pneg %p3317_p11 }
  0x50   : > { %p3047_p7 = scmp.ne.s32.totalorder %s3313_s13, %s3046_s20  ;;  %s3051_s11 = scalar_lea.hbm %s3939_s0, 512 }
  0x51   : > { %p3052_p9 = scmp.lt.s32.totalorder %s3313_s13, %s3939_s0  ;;  %p3053_p1 = scmp.lt.s32.totalorder %s3051_s11, %s3046_s20 }
  0x52   : > { %p3049_p13 = pnand %p3048_p10, %p3047_p7 }
  0x53   : > { %p3054_p12 = por %p3053_p1, %p3052_p9 }
  0x54   : > { %p3050_p0 = pneg %p3049_p13 }
  0x56   : > { %p3055_p2 = pnand %p3054_p12, %p3050_p0 }
  0x58   : > { %3058 = shalt.err (!%p3055_p2)
}
  0x59   : > { %s3059_s10 = scalar_lea.vmem %s3315_s17, 256  ;;  %s3154_s15 = smov [#allocation2]  }
  0x5a   : > { %p3060_p3 = scmp.ne.s32.totalorder %s3315_s17, %s3059_s10  ;;  %s3064_s1 = sshll.u32 %s3154_s15, 4  ;;  %s3065_s1 = int_to_ptr.vmem [resolvable:$false] %s3064_s1 }
  0x5b   : > { %s3066_s14 = scalar_lea.vmem %s3065_s1, 512  ;;  %p3067_p8 = scmp.lt.s32.totalorder %s3315_s17, %s3065_s1 }
  0x5c   : > { %p3062_p5 = pnand %p3060_p3, %p3048_p10  ;;  %p3068_p7 = scmp.lt.s32.totalorder %s3066_s14, %s3059_s10 }
  0x5e   : > { %p3063_p6 = pneg %p3062_p5  ;;  %p3069_p13 = por %p3068_p7, %p3067_p8 }
  0x60   : > { %p3070_p4 = pnand %p3069_p13, %p3063_p6 }
  0x62   : > { %3073 = shalt.err (!%p3070_p4)
}
  0x63   : > { %s3155_s20 = smov 128   ;;  %s3156_s21 = smov 8  }
  0x64   : > { %2840 = dma.hbm_to_vmem [thread:$0]  (!%p3317_p11), %s3313_s13, 256, %s3315_s17, %s3321_s19, %s3155_s20, %s3155_s20, %s3156_s21  }
  0x65   : > { %p3960_p10 = scmp.ne.s32.totalorder %s3954_s9, 0 }
  0x66   : > { %s3345_s11 = sand.u32 (!%p3960_p10), 1, %s3138_s25   ;;  %p3961_p4 = scmp.ne.s32.totalorder (!%p3960_p10), %s3952_s30, 0 }
  0x67   : > { %299 = sbr.rel (%p3960_p10) target bundleno = 1196 (0x4ac), region = 48  ;;  %s2606_s1 = sshll.u32 (!%p3960_p10), %s3345_s11, 4 }
  0x68   : > { %s302_s22 = scalar_lea.sflag (!%p3960_p10), [#allocation3], %s3345_s11  ;;  %s305_s12 = scalar_lea.vmem (!%p3960_p10), [#allocation2], %s2606_s1 }
  0x6c   : > { %3117 = dma.done.wait (%p3961_p4), %s302_s22, 256  }
  0x6d   : > { %3119 = vsyncadd (%p3961_p4), %s302_s22, 4294967040  ;;  %p3962_p0 = scmp.eq.s32.totalorder %s3223_s28, 0 }
  0x6f   : > { %3121 = dma.done.wait (%p3962_p0), [#allocation6], 192   ;;  %p3963_p11 = pmov %p3962_p0 }
  0x70   : > { %p3964_p9 = pmov %p3962_p0 }
  0x71   : > { %3123 = vsyncadd (%p3963_p11), [#allocation6], 4294967104 }
  0x72   : > { %3125 = dma.done.wait (%p3964_p9), [#allocation9], 5120   ;;  %p3965_p1 = pmov %p3962_p0 }
  0x73   : > { %v356_v0 = vld [vmem:[%s305_s12] sm:$0xff]  ;;  %v441_v2 = vlaneseq  ;;  %v3157_v3 = vmov 1983009808   ;;  %vm528_vm0 = vcmask 1041408   ;;  %v2646_v12 = vld [vmem:[%s305_s12 + $0x8] sm:$0xff]  ;;  %v3158_v15 = vmov 0  }
  0x74   : > { %3127 = vsyncadd (%p3965_p1), [#allocation9], 4294962176  ;;  %v358_v1 = vcombine.high %v356_v0, %v356_v0  ;;  %v464_v4 = vunpack.c.l.s4 %v3157_v3  ;;  %v354_v8 = vld [vmem:[#allocation5] sm:$0xff]  ;;  %1212 = vxpose.xlu1.b32.start.end [1/1] (short) %v2646_v12, 128  ;;  %713 = vmatprep.mubr.bf16.mxu1 %v3158_v15  ;;  %v1210_v17 = vcombine.high %v2646_v12, %v2646_v12  ;;  %vm479_vm1 = vcmask 31744   ;;  %s2611_s13 = sshll.u32 %s3345_s11, 1  ;;  %s2724_s19 = sshll.u32 %s3223_s28, 5 }
  0x75   : > { %v3361_v5 = vshrl.u32 %v441_v2, 7  ;;  %v462_v10 = vcombine.high %v354_v8, %v354_v8  ;;  %573 = vmatprep.mubr.bf16.mxu0 %v3158_v15  ;;  %vm2006_vm2 = vcmask 1040384   ;;  %vm3160_vm3 = vmmov 0   ;;  %s351_s10 = scalar_lea.vmem [#allocation11], %s2611_s13  ;;  %s3896_s21 = scalar_lea.hbm %s3946_s7, %s2724_s19 }
  0x76   : > { %392 = vxpose.xlu0.b32.start.end [1/1] (short) %v358_v1, 128  ;;  %v465_v6 = vunpack.c.0.s8 %v464_v4  ;;  %s2486_s15 = sshll.u32 %s351_s10, 4  ;;  %s2473_s1 = scalar_lea.sflag [#allocation4], %s3345_s11  ;;  %s3898_s15 = int_to_ptr.vmem [resolvable:$true] %s2486_s15 }
  0x77   : > { %s3074_s22 = scalar_lea.vmem %s3898_s15, 32  ;;  %p3966_p2 = scmp.ne.s32.totalorder %s3958_s23, 0 }
  0x78   : > { %v468_v7 = vsub.s32 %v465_v6, %v3361_v5  ;;  %p3075_p12 = scmp.ne.s32.totalorder %s3898_s15, %s3074_s22  ;;  %s3161_s28 = smov [#allocation11]  }
  0x79   : > { %s3078_s12 = sshll.u32 %s3161_s28, 4  ;;  %s3079_s12 = int_to_ptr.vmem [resolvable:$false] %s3078_s12 }
  0x7a   : > { %v469_v9 = vrot.slane %v354_v8, %v468_v7  ;;  %v476_v14 = vrot.slane %v462_v10, %v468_v7  ;;  %p3076_p3 = pnand %p3075_p12, %p3966_p2  ;;  %s3080_s30 = scalar_lea.vmem %s3079_s12, 64 }
  0x7b   : > { %p3081_p6 = scmp.lt.s32.totalorder %s3898_s15, %s3079_s12  ;;  %p3082_p8 = scmp.lt.s32.totalorder %s3080_s30, %s3074_s22 }
  0x7c   : > { %v477_v11 = vcombine.high %v469_v9, %v469_v9  ;;  %v530_v13 = vsel %vm528_vm0, %v469_v9, 0  ;;  %v478_v16 = vcombine.high %v476_v14, %v476_v14  ;;  %v536_v39 = vsel %vm528_vm0, %v476_v14, 0  ;;  %p3077_p5 = pneg %p3076_p3 }
  0x7d   : > { %p3083_p7 = por %p3082_p8, %p3081_p6 }
  0x7e   : > { %2802 = vmatprep.subr.msk.bf16.mxu1 %vm528_vm0, %v477_v11  ;;  %2612 = vmatprep.subr.msk.bf16.mxu0 %vm528_vm0, %v477_v11 }
  0x7f   : > { %2803 = vmatpush1.bf16.msra.mxu1 %v530_v13  ;;  %556 = vmatpush1.bf16.msra.mxu0 %v530_v13  ;;  %p3084_p13 = pnand %p3083_p7, %p3077_p5 }
  0x80   : > { %2647 = vmatprep.subr.msk.bf16.mxu0 %vm528_vm0, %v477_v11  ;;  %2629 = vmatprep.subr.msk.bf16.mxu1 %vm528_vm0, %v478_v16 }
  0xb1   : > { %1244 = vxpose.xlu1.b32.start.end [1/1] (short) %v1210_v17, 128 }
  0xb3   : > { %360 = vxpose.xlu0.b32.start.end [1/1] (short) %v356_v0, 128 }
  0xf0   : > { %v1228_v61 = vpop.trf.xlu1 }
  0xf2   : > { %v408_v18 = vpop.trf.xlu0 }
  0xf4   : > { %v1229_v0 = vpop.trf.xlu1 }
  0xf5   : > { %v1276_v17 = vpack.c.bf16 %v1229_v0, %v1228_v61 }
  0xf6   : > { %v409_v19 = vpop.trf.xlu0 }
  0xf7   : > { %v3371_v20 = vpack.c.bf16 %v409_v19, %v408_v18 }
  0xf8   : > { %v1230_v3 = vpop.trf.xlu1 }
  0xfa   : > { %v410_v21 = vpop.trf.xlu0 }
  0xfc   : > { %v1231_v7 = vpop.trf.xlu1 }
  0xfd   : > { %v1277_v19 = vpack.c.bf16 %v1231_v7, %v1230_v3 }
  0xfe   : > { %v411_v22 = vpop.trf.xlu0 }
  0xff   : > { %v3373_v23 = vpack.c.bf16 %v411_v22, %v410_v21 }
 0x100   : > { %v1232_v8 = vpop.trf.xlu1 }
 0x102   : > { %v412_v24 = vpop.trf.xlu0 }
 0x104   : > { %v1233_v9 = vpop.trf.xlu1 }
 0x105   : > { %v1278_v22 = vpack.c.bf16 %v1233_v9, %v1232_v8 }
 0x106   : > { %v413_v25 = vpop.trf.xlu0 }
 0x107   : > { %v3375_v26 = vpack.c.bf16 %v413_v25, %v412_v24 }
 0x108   : > { %v1234_v10 = vpop.trf.xlu1 }
 0x10a   : > { %v414_v27 = vpop.trf.xlu0 }
 0x10c   : > { %v1235_v11 = vpop.trf.xlu1 }
 0x10d   : > { %v1279_v24 = vpack.c.bf16 %v1235_v11, %v1234_v10 }
 0x10e   : > { %v415_v28 = vpop.trf.xlu0 }
 0x10f   : > { %v3377_v29 = vpack.c.bf16 %v415_v28, %v414_v27 }
 0x110   : > { %v1236_v12 = vpop.trf.xlu1 }
 0x112   : > { %v416_v30 = vpop.trf.xlu0 }
 0x116   : > { %v417_v31 = vpop.trf.xlu0 }
 0x117   : > { %v3379_v32 = vpack.c.bf16 %v417_v31, %v416_v30 }
 0x11a   : > { %v418_v33 = vpop.trf.xlu0 }
 0x11e   : > { %v419_v34 = vpop.trf.xlu0 }
 0x11f   : > { %v3381_v35 = vpack.c.bf16 %v419_v34, %v418_v33 }
 0x122   : > { %v420_v36 = vpop.trf.xlu0 }
 0x126   : > { %v421_v37 = vpop.trf.xlu0 }
 0x127   : > { %v3383_v38 = vpack.c.bf16 %v421_v37, %v420_v36  ;;  %v355_v36 = vld [vmem:[#allocation7] sm:$0xf]  ;;  %v447_v37 = vsub.s32 1, %v3361_v5 }
 0x129   : > { %2627 = vmatmul.mubr.msk.bf16.vlgmr.msra.gmra.mxu1 %vm479_vm1, %v3383_v38 }
 0x12a   : > { %749 = vmatpush1.bf16.msra.mxu1 %v536_v39  ;;  %v422_v40 = vpop.trf.xlu0  ;;  %723 = vmatprep.mubr.bf16.mxu1 %v3158_v15 }
 0x12b   : > { %2664 = vmatprep.subr.msk.bf16.mxu1 %vm528_vm0, %v478_v16 }
 0x12e   : > { %v423_v41 = vpop.trf.xlu0 }
 0x12f   : > { %v3390_v42 = vpack.c.bf16 %v423_v41, %v422_v40  ;;  %v3501_v41 = vrot.slane %v355_v36, %v447_v37 }
 0x131   : > { %2628 = vmatmul.mubr.msk.bf16.gmra.mxu1 %vm479_vm1, %v3390_v42 }
 0x132   : > { %v376_v43 = vpop.trf.xlu0  ;;  %766 = vmatprep.mubr.bf16.mxu1 %v3158_v15 }
 0x136   : > { %v377_v44 = vpop.trf.xlu0 }
 0x137   : > { %v424_v45 = vpack.c.bf16 %v377_v44, %v376_v43 }
 0x139   : > { %2613 = vmatmul.mubr.msk.bf16.vlgmr.msra.gmra.mxu0 %vm479_vm1, %v424_v45  ;;  %2630 = vmatmul.mubr.msk.bf16.vlgmr.msra.gmra.mxu1 %vm479_vm1, %v424_v45 }
 0x13a   : > { %1548 = vmatpush1.bf16.msra.mxu1 %v536_v39  ;;  %v378_v46 = vpop.trf.xlu0  ;;  %583 = vmatprep.mubr.bf16.mxu0 %v3158_v15 }
 0x13b   : > { %776 = vmatprep.mubr.bf16.mxu1 %v3158_v15  ;;  %1355 = vmatpush1.bf16.msra.mxu0 %v530_v13  ;;  %v1237_v13 = vpop.trf.xlu1 }
 0x13e   : > { %v379_v47 = vpop.trf.xlu0 }
 0x13f   : > { %v425_v48 = vpack.c.bf16 %v379_v47, %v378_v46  ;;  %v1238_v14 = vpop.trf.xlu1 }
 0x141   : > { %2614 = vmatmul.mubr.msk.bf16.gmra.mxu0 %vm479_vm1, %v425_v48  ;;  %2631 = vmatmul.mubr.msk.bf16.gmra.mxu1 %vm479_vm1, %v425_v48 }
 0x142   : > { %v380_v49 = vpop.trf.xlu0  ;;  %593 = vmatprep.mubr.bf16.mxu0 %v3158_v15  ;;  %786 = vmatprep.mubr.bf16.mxu1 %v3158_v15 }
 0x143   : > { %v1239_v16 = vpop.trf.xlu1 }
 0x146   : > { %v381_v50 = vpop.trf.xlu0 }
 0x147   : > { %v426_v51 = vpack.c.bf16 %v381_v50, %v380_v49  ;;  %v1240_v18 = vpop.trf.xlu1 }
 0x149   : > { %2615 = vmatmul.mubr.msk.bf16.gmra.mxu0 %vm479_vm1, %v426_v51  ;;  %2632 = vmatmul.mubr.msk.bf16.gmra.mxu1 %vm479_vm1, %v426_v51 }
 0x14a   : > { %v382_v52 = vpop.trf.xlu0  ;;  %603 = vmatprep.mubr.bf16.mxu0 %v3158_v15  ;;  %796 = vmatprep.mubr.bf16.mxu1 %v3158_v15 }
 0x14e   : > { %v383_v53 = vpop.trf.xlu0 }
 0x14f   : > { %v427_v54 = vpack.c.bf16 %v383_v53, %v382_v52 }
 0x151   : > { %2616 = vmatmul.mubr.msk.bf16.gmra.mxu0 %vm479_vm1, %v427_v54  ;;  %2633 = vmatmul.mubr.msk.bf16.gmra.mxu1 %vm479_vm1, %v427_v54  ;;  %v451_v54 = vsub.s32 2, %v3361_v5 }
 0x152   : > { %v384_v55 = vpop.trf.xlu0  ;;  %613 = vmatprep.mubr.bf16.mxu0 %v3158_v15  ;;  %806 = vmatprep.mubr.bf16.mxu1 %v3158_v15 }
 0x153   : > { %v3535_v61 = vrot.slane %v355_v36, %v451_v54 }
 0x156   : > { %v385_v56 = vpop.trf.xlu0 }
 0x157   : > { %v428_v57 = vpack.c.bf16 %v385_v56, %v384_v55 }
 0x159   : > { %2617 = vmatmul.mubr.msk.bf16.gmra.mxu0 %vm479_vm1, %v428_v57  ;;  %2634 = vmatmul.mubr.msk.bf16.gmra.mxu1 %vm479_vm1, %v428_v57  ;;  %v455_v57 = vsub.s32 3, %v3361_v5 }
 0x15a   : > { %v386_v58 = vpop.trf.xlu0  ;;  %623 = vmatprep.mubr.bf16.mxu0 %v3158_v15  ;;  %816 = vmatprep.mubr.bf16.mxu1 %v3158_v15 }
 0x15e   : > { %v387_v59 = vpop.trf.xlu0 }
 0x15f   : > { %v429_v60 = vpack.c.bf16 %v387_v59, %v386_v58 }
 0x161   : > { %2618 = vmatmul.mubr.msk.bf16.gmra.mxu0 %vm479_vm1, %v429_v60  ;;  %2635 = vmatmul.mubr.msk.bf16.gmra.mxu1 %vm479_vm1, %v429_v60 }
 0x162   : > { %v388_v62 = vpop.trf.xlu0  ;;  %633 = vmatprep.mubr.bf16.mxu0 %v3158_v15  ;;  %826 = vmatprep.mubr.bf16.mxu1 %v3158_v15 }
 0x166   : > { %v389_v63 = vpop.trf.xlu0 }
 0x167   : > { %v430_v1 = vpack.c.bf16 %v389_v63, %v388_v62 }
 0x169   : > { %2619 = vmatmul.mubr.msk.bf16.gmra.mxu0 %vm479_vm1, %v430_v1  ;;  %2636 = vmatmul.mubr.msk.bf16.gmra.mxu1 %vm479_vm1, %v430_v1  ;;  %v3540_v1 = vrot.slane %v355_v36, %v455_v57 }
 0x16a   : > { %v390_v2 = vpop.trf.xlu0  ;;  %643 = vmatprep.mubr.bf16.mxu0 %v3158_v15  ;;  %836 = vmatprep.mubr.bf16.mxu1 %v3158_v15 }
 0x16e   : > { %v391_v4 = vpop.trf.xlu0 }
 0x16f   : > { %v431_v6 = vpack.c.bf16 %v391_v4, %v390_v2 }
 0x171   : > { %2620 = vmatmul.mubr.msk.bf16.gmra.mxu0 %vm479_vm1, %v431_v6  ;;  %2637 = vmatmul.mubr.msk.bf16.gmra.mxu1 %vm479_vm1, %v431_v6 }
 0x172   : > { %653 = vmatprep.mubr.bf16.mxu0 %v3158_v15  ;;  %846 = vmatprep.mubr.bf16.mxu1 %v3158_v15 }
 0x179   : > { %2621 = vmatmul.mubr.msk.bf16.gmra.mxu0 %vm479_vm1, %v3371_v20  ;;  %2638 = vmatmul.mubr.msk.bf16.gmra.mxu1 %vm479_vm1, %v3371_v20  ;;  %v1241_v20 = vpop.trf.xlu1 }
 0x17a   : > { %663 = vmatprep.mubr.bf16.mxu0 %v3158_v15  ;;  %856 = vmatprep.mubr.bf16.mxu1 %v3158_v15  ;;  %v1282_v31 = vpack.c.bf16 %v1241_v20, %v1240_v18 }
 0x17d   : > { %v1242_v21 = vpop.trf.xlu1 }
 0x181   : > { %2622 = vmatmul.mubr.msk.bf16.gmra.mxu0 %vm479_vm1, %v3373_v23  ;;  %2639 = vmatmul.mubr.msk.bf16.gmra.mxu1 %vm479_vm1, %v3373_v23  ;;  %v1243_v23 = vpop.trf.xlu1 }
 0x182   : > { %673 = vmatprep.mubr.bf16.mxu0 %v3158_v15  ;;  %866 = vmatprep.mubr.bf16.mxu1 %v3158_v15  ;;  %v1283_v33 = vpack.c.bf16 %v1243_v23, %v1242_v21 }
 0x185   : > { %v1260_v25 = vpop.trf.xlu1 }
 0x189   : > { %2623 = vmatmul.mubr.msk.bf16.gmra.mxu0 %vm479_vm1, %v3375_v26  ;;  %2640 = vmatmul.mubr.msk.bf16.gmra.mxu1 %vm479_vm1, %v3375_v26  ;;  %v1280_v26 = vpack.c.bf16 %v1237_v13, %v1236_v12  ;;  %v1261_v27 = vpop.trf.xlu1 }
 0x18a   : > { %683 = vmatprep.mubr.bf16.mxu0 %v3158_v15  ;;  %876 = vmatprep.mubr.bf16.mxu1 %v3158_v15  ;;  %v1284_v39 = vpack.c.bf16 %v1261_v27, %v1260_v25 }
 0x18d   : > { %v1262_v28 = vpop.trf.xlu1 }
 0x191   : > { %2624 = vmatmul.mubr.msk.bf16.gmra.mxu0 %vm479_vm1, %v3377_v29  ;;  %2641 = vmatmul.mubr.msk.bf16.gmra.mxu1 %vm479_vm1, %v3377_v29  ;;  %v1281_v29 = vpack.c.bf16 %v1239_v16, %v1238_v14  ;;  %v1263_v30 = vpop.trf.xlu1 }
 0x192   : > { %693 = vmatprep.mubr.bf16.mxu0 %v3158_v15  ;;  %886 = vmatprep.mubr.bf16.mxu1 %v3158_v15  ;;  %v1285_v48 = vpack.c.bf16 %v1263_v30, %v1262_v28 }
 0x199   : > { %2625 = vmatmul.mubr.msk.bf16.gmra.mxu0 %vm479_vm1, %v3379_v32  ;;  %2642 = vmatmul.mubr.msk.bf16.gmra.mxu1 %vm479_vm1, %v3379_v32  ;;  %v1264_v32 = vpop.trf.xlu1 }
 0x19a   : > { %703 = vmatprep.mubr.bf16.mxu0 %v3158_v15  ;;  %896 = vmatprep.mubr.bf16.mxu1 %v3158_v15 }
 0x19d   : > { %v1265_v34 = vpop.trf.xlu1 }
 0x19e   : > { %v3533_v60 = vpack.c.bf16 %v1265_v34, %v1264_v32 }
 0x1a1   : > { %2626 = vmatmul.mubr.msk.bf16.gmra.mxu0 %vm479_vm1, %v3381_v35  ;;  %2643 = vmatmul.mubr.msk.bf16.gmra.mxu1 %vm479_vm1, %v3381_v35  ;;  %v443_v35 = vsub.s32 0, %v3361_v5 }
 0x1a2   : > { %906 = vmatprep.mubr.bf16.mxu1 %v3158_v15  ;;  %1372 = vmatprep.mubr.bf16.mxu0 %v3158_v15 }
 0x1a3   : > { %v3499_v40 = vrot.slane %v355_v36, %v443_v35 }
 0x1a9   : > { %2644 = vmatmul.mubr.msk.bf16.gmra.mxu1 %vm479_vm1, %v3383_v38  ;;  %2648 = vmatmul.mubr.msk.bf16.vlgmr.msra.gmra.mxu0 %vm479_vm1, %v1276_v17  ;;  %v1266_v38 = vpop.trf.xlu1 }
 0x1aa   : > { %916 = vmatprep.mubr.bf16.mxu1 %v3158_v15  ;;  %1382 = vmatprep.mubr.bf16.mxu0 %v3158_v15 }
 0x1ad   : > { %v1267_v44 = vpop.trf.xlu1 }
 0x1ae   : > { %v3556_v14 = vpack.c.bf16 %v1267_v44, %v1266_v38 }
 0x1b1   : > { %2645 = vmatmul.mubr.msk.bf16.gmra.mxu1 %vm479_vm1, %v3390_v42  ;;  %2649 = vmatmul.mubr.msk.bf16.gmra.mxu0 %vm479_vm1, %v1277_v19  ;;  %v3519_v52 = vpop.trf.xlu1 }
 0x1b2   : > { %1392 = vmatprep.mubr.bf16.mxu0 %v3158_v15  ;;  %1565 = vmatprep.mubr.bf16.mxu1 %v3158_v15 }
 0x1b5   : > { %v1269_v63 = vpop.trf.xlu1 }
 0x1b6   : > { %v3572_v54 = vpack.c.bf16 %v1269_v63, %v3519_v52 }
 0x1b9   : > { %2650 = vmatmul.mubr.msk.bf16.gmra.mxu0 %vm479_vm1, %v1278_v22  ;;  %2665 = vmatmul.mubr.msk.bf16.vlgmr.msra.gmra.mxu1 %vm479_vm1, %v1276_v17  ;;  %v3554_v11 = vpop.trf.xlu1 }
 0x1ba   : > { %1402 = vmatprep.mubr.bf16.mxu0 %v3158_v15  ;;  %1575 = vmatprep.mubr.bf16.mxu1 %v3158_v15 }
 0x1bd   : > { %v1271_v34 = vpop.trf.xlu1 }
 0x1c1   : > { %2651 = vmatmul.mubr.msk.bf16.gmra.mxu0 %vm479_vm1, %v1279_v24  ;;  %2666 = vmatmul.mubr.msk.bf16.gmra.mxu1 %vm479_vm1, %v1277_v19 }
 0x1c2   : > { %1412 = vmatprep.mubr.bf16.mxu0 %v3158_v15  ;;  %1585 = vmatprep.mubr.bf16.mxu1 %v3158_v15 }
 0x1c9   : > { %2652 = vmatmul.mubr.msk.bf16.gmra.mxu0 %vm479_vm1, %v1280_v26  ;;  %2667 = vmatmul.mubr.msk.bf16.gmra.mxu1 %vm479_vm1, %v1278_v22 }
 0x1ca   : > { %1422 = vmatprep.mubr.bf16.mxu0 %v3158_v15  ;;  %1595 = vmatprep.mubr.bf16.mxu1 %v3158_v15 }
 0x1d1   : > { %2653 = vmatmul.mubr.msk.bf16.gmra.mxu0 %vm479_vm1, %v1281_v29  ;;  %2668 = vmatmul.mubr.msk.bf16.gmra.mxu1 %vm479_vm1, %v1279_v24 }
 0x1d2   : > { %1432 = vmatprep.mubr.bf16.mxu0 %v3158_v15  ;;  %1605 = vmatprep.mubr.bf16.mxu1 %v3158_v15 }
 0x1d9   : > { %2654 = vmatmul.mubr.msk.bf16.gmra.mxu0 %vm479_vm1, %v1282_v31  ;;  %2669 = vmatmul.mubr.msk.bf16.gmra.mxu1 %vm479_vm1, %v1280_v26 }
 0x1da   : > { %1442 = vmatprep.mubr.bf16.mxu0 %v3158_v15  ;;  %1615 = vmatprep.mubr.bf16.mxu1 %v3158_v15 }
 0x1e1   : > { %2655 = vmatmul.mubr.msk.bf16.gmra.mxu0 %vm479_vm1, %v1283_v33  ;;  %2670 = vmatmul.mubr.msk.bf16.gmra.mxu1 %vm479_vm1, %v1281_v29 }
 0x1e2   : > { %1452 = vmatprep.mubr.bf16.mxu0 %v3158_v15  ;;  %1625 = vmatprep.mubr.bf16.mxu1 %v3158_v15 }
 0x1e9   : > { %v715_v42 = vpop.f32.mrf.mxu1  ;;  %2656 = vmatmul.mubr.msk.bf16.gmra.mxu0 %vm479_vm1, %v1284_v39  ;;  %2671 = vmatmul.mubr.msk.bf16.gmra.mxu1 %vm479_vm1, %v1282_v31 }
 0x1ea   : > { %v3506_v43 = vadd.f32 %v715_v42, %v3499_v40  ;;  %1462 = vmatprep.mubr.bf16.mxu0 %v3158_v15  ;;  %1635 = vmatprep.mubr.bf16.mxu1 %v3158_v15 }
 0x1eb   : > { %v717_v45 = vpop.f32.mrf.mxu1 }
 0x1ec   : > { %v3511_v46 = vadd.f32 %v717_v45, %v3501_v41 }
 0x1ed   : > { %v719_v47 = vpop.f32.mrf.mxu1 }
 0x1ee   : > { %v3514_v49 = vadd.f32 %v719_v47, %v3499_v40 }
 0x1ef   : > { %v721_v50 = vpop.f32.mrf.mxu1 }
 0x1f0   : > { %v3517_v51 = vadd.f32 %v721_v50, %v3501_v41 }
 0x1f1   : > { %v725_v53 = vpop.f32.mrf.mxu1  ;;  %2657 = vmatmul.mubr.msk.bf16.gmra.mxu0 %vm479_vm1, %v1285_v48  ;;  %2672 = vmatmul.mubr.msk.bf16.gmra.mxu1 %vm479_vm1, %v1283_v33 }
 0x1f2   : > { %v3525_v55 = vadd.f32 %v725_v53, %v3499_v40  ;;  %1472 = vmatprep.mubr.bf16.mxu0 %v3158_v15  ;;  %1645 = vmatprep.mubr.bf16.mxu1 %v3158_v15 }
 0x1f3   : > { %v727_v56 = vpop.f32.mrf.mxu1 }
 0x1f4   : > { %v3531_v58 = vadd.f32 %v727_v56, %v3501_v41 }
 0x1f5   : > { %v729_v59 = vpop.f32.mrf.mxu1 }
 0x1f6   : > { %v3538_v62 = vadd.f32 %v729_v59, %v3499_v40 }
 0x1f7   : > { %v731_v0 = vpop.f32.mrf.mxu1 }
 0x1f8   : > { %v3543_v2 = vadd.f32 %v731_v0, %v3501_v41 }
 0x1f9   : > { %v575_v3 = vpop.f32.mrf.mxu0  ;;  %v768_v5 = vpop.f32.mrf.mxu1  ;;  %2658 = vmatmul.mubr.msk.bf16.gmra.mxu0 %vm479_vm1, %v3533_v60  ;;  %2673 = vmatmul.mubr.msk.bf16.gmra.mxu1 %vm479_vm1, %v1284_v39 }
 0x1fa   : > { %v576_v4 = vadd.f32 %v575_v3, %v3499_v40  ;;  %v769_v6 = vadd.f32 %v768_v5, %v3535_v61  ;;  %1482 = vmatprep.mubr.bf16.mxu0 %v3158_v15  ;;  %1655 = vmatprep.mubr.bf16.mxu1 %v3158_v15 }
 0x1fb   : > { %v577_v7 = vpop.f32.mrf.mxu0  ;;  %v770_v8 = vpop.f32.mrf.mxu1 }
 0x1fc   : > { %v578_v9 = vadd.f32 %v577_v7, %v3501_v41  ;;  %v771_v10 = vadd.f32 %v770_v8, %v3540_v1  ;;  %v927_v18 = vmax.f32 %v576_v4, 0.0  ;;  %v929_v19 = vmax.f32 %v769_v6, 0.0 }
 0x1fd   : > { %v579_v12 = vpop.f32.mrf.mxu0  ;;  %v772_v13 = vpop.f32.mrf.mxu1 }
 0x1fe   : > { %v580_v16 = vadd.f32 %v579_v12, %v3499_v40  ;;  %v773_v17 = vadd.f32 %v772_v13, %v3535_v61  ;;  %v928_v26 = vmax.f32 %v578_v9, 0.0  ;;  %v930_v27 = vmax.f32 %v771_v10, 0.0  ;;  %v3576_v12 = vpop.trf.xlu1 }
 0x1ff   : > { %v581_v20 = vpop.f32.mrf.mxu0  ;;  %v774_v21 = vpop.f32.mrf.mxu1 }
 0x200   : > { %v931_v22 = vmax.f32 %v580_v16, 0.0  ;;  %v933_v23 = vmax.f32 %v773_v17, 0.0  ;;  %v582_v24 = vadd.f32 %v581_v20, %v3501_v41  ;;  %v775_v25 = vadd.f32 %v774_v21, %v3540_v1 }
 0x201   : > { %v585_v28 = vpop.f32.mrf.mxu0  ;;  %v778_v29 = vpop.f32.mrf.mxu1  ;;  %2659 = vmatmul.mubr.msk.bf16.gmra.mxu0 %vm479_vm1, %v3556_v14  ;;  %2674 = vmatmul.mubr.msk.bf16.gmra.mxu1 %vm479_vm1, %v1285_v48 }
 0x202   : > { %v1055_v30 = vadd.f32 %v931_v22, %v927_v18  ;;  %v1129_v31 = vadd.f32 %v933_v23, %v929_v19  ;;  %v932_v32 = vmax.f32 %v582_v24, 0.0  ;;  %v934_v33 = vmax.f32 %v775_v25, 0.0  ;;  %1492 = vmatprep.mubr.bf16.mxu0 %v3158_v15  ;;  %1665 = vmatprep.mubr.bf16.mxu1 %v3158_v15 }
 0x203   : > { %v586_v35 = vadd.f32 %v585_v28, %v3499_v40  ;;  %v779_v36 = vadd.f32 %v778_v29, %v3535_v61  ;;  %v587_v37 = vpop.f32.mrf.mxu0  ;;  %v780_v38 = vpop.f32.mrf.mxu1 }
 0x204   : > { %v1092_v39 = vadd.f32 %v932_v32, %v928_v26  ;;  %v1166_v42 = vadd.f32 %v934_v33, %v930_v27  ;;  %v588_v44 = vadd.f32 %v587_v37, %v3501_v41  ;;  %v781_v45 = vadd.f32 %v780_v38, %v3540_v1  ;;  %v1273_v38 = vpop.trf.xlu1 }
 0x205   : > { %v935_v47 = vmax.f32 %v586_v35, 0.0  ;;  %v937_v48 = vmax.f32 %v779_v36, 0.0  ;;  %v589_v50 = vpop.f32.mrf.mxu0  ;;  %v782_v53 = vpop.f32.mrf.mxu1  ;;  %v3591_v32 = vpack.c.bf16 %v1271_v34, %v3554_v11 }
 0x206   : > { %v936_v56 = vmax.f32 %v588_v44, 0.0  ;;  %v938_v57 = vmax.f32 %v781_v45, 0.0  ;;  %v590_v59 = vadd.f32 %v589_v50, %v3499_v40  ;;  %v783_v0 = vadd.f32 %v782_v53, %v3535_v61 }
 0x207   : > { %v1056_v3 = vadd.f32 %v1055_v30, %v935_v47  ;;  %v1130_v5 = vadd.f32 %v1129_v31, %v937_v48  ;;  %v591_v4 = vpop.f32.mrf.mxu0  ;;  %v784_v6 = vpop.f32.mrf.mxu1 }
 0x208   : > { %v1093_v7 = vadd.f32 %v1092_v39, %v936_v56  ;;  %v1167_v8 = vadd.f32 %v1166_v42, %v938_v57  ;;  %v939_v9 = vmax.f32 %v590_v59, 0.0  ;;  %v941_v10 = vmax.f32 %v783_v0, 0.0 }
 0x209   : > { %v592_v13 = vadd.f32 %v591_v4, %v3501_v41  ;;  %v785_v52 = vadd.f32 %v784_v6, %v3540_v1  ;;  %v595_v63 = vpop.f32.mrf.mxu0  ;;  %v788_v16 = vpop.f32.mrf.mxu1  ;;  %2660 = vmatmul.mubr.msk.bf16.gmra.mxu0 %vm479_vm1, %v3572_v54  ;;  %2675 = vmatmul.mubr.msk.bf16.gmra.mxu1 %vm479_vm1, %v3533_v60 }
 0x20a   : > { %v1057_v17 = vadd.f32 %v1056_v3, %v939_v9  ;;  %v1131_v18 = vadd.f32 %v1130_v5, %v941_v10  ;;  %v596_v19 = vadd.f32 %v595_v63, %v3499_v40  ;;  %v789_v20 = vadd.f32 %v788_v16, %v3535_v61  ;;  %1502 = vmatprep.mubr.bf16.mxu0 %v3158_v15  ;;  %v2902_v9 = vld [vmem:[#allocation8 + $0x78] sm:$0xff]   ;;  %v1274_v16 = vpop.trf.xlu1 }
 0x20b   : > { %v940_v21 = vmax.f32 %v592_v13, 0.0  ;;  %v942_v22 = vmax.f32 %v785_v52, 0.0  ;;  %v597_v23 = vpop.f32.mrf.mxu0  ;;  %v790_v24 = vpop.f32.mrf.mxu1  ;;  %1675 = vmatprep.mubr.bf16.mxu1 %v3158_v15  ;;  %v2903_v10 = vld [vmem:[#allocation8 + $0x38] sm:$0xff]   ;;  %2729 = vmatprep.subr.bf16.mxu0 %v2902_v9 }
 0x20c   : > { %v943_v25 = vmax.f32 %v596_v19, 0.0  ;;  %v945_v26 = vmax.f32 %v789_v20, 0.0  ;;  %v598_v27 = vadd.f32 %v597_v23, %v3501_v41  ;;  %v791_v60 = vadd.f32 %v790_v24, %v3540_v1  ;;  %2730 = vmatpush3.bf16.msra.mxu0 %v2903_v10 }
 0x20d   : > { %v1094_v28 = vadd.f32 %v1093_v7, %v940_v21  ;;  %v1168_v29 = vadd.f32 %v1167_v8, %v942_v22  ;;  %v599_v30 = vpop.f32.mrf.mxu0  ;;  %v792_v31 = vpop.f32.mrf.mxu1  ;;  %v3608_v23 = vpack.c.bf16 %v1273_v38, %v3576_v12 }
 0x20e   : > { %v1058_v33 = vadd.f32 %v1057_v17, %v943_v25  ;;  %v1132_v35 = vadd.f32 %v1131_v18, %v945_v26  ;;  %v944_v36 = vmax.f32 %v598_v27, 0.0  ;;  %v946_v37 = vmax.f32 %v791_v60, 0.0  ;;  %v2904_v17 = vld [vmem:[#allocation8 + $0xf8] sm:$0xff]  }
 0x20f   : > { %v600_v39 = vadd.f32 %v599_v30, %v3499_v40  ;;  %v793_v42 = vadd.f32 %v792_v31, %v3535_v61  ;;  %v601_v44 = vpop.f32.mrf.mxu0  ;;  %v794_v45 = vpop.f32.mrf.mxu1  ;;  %v2905_v18 = vld [vmem:[#allocation8 + $0xb8] sm:$0xff]   ;;  %2751 = vmatprep.subr.bf16.mxu1 %v2904_v17 }
 0x210   : > { %v1095_v47 = vadd.f32 %v1094_v28, %v944_v36  ;;  %v1169_v48 = vadd.f32 %v1168_v29, %v946_v37  ;;  %v602_v50 = vadd.f32 %v601_v44, %v3501_v41  ;;  %v795_v53 = vadd.f32 %v794_v45, %v3540_v1  ;;  %2752 = vmatpush3.bf16.msra.mxu1 %v2905_v18 }
 0x211   : > { %v947_v56 = vmax.f32 %v600_v39, 0.0  ;;  %v949_v11 = vmax.f32 %v793_v42, 0.0  ;;  %v605_v34 = vpop.f32.mrf.mxu0  ;;  %v798_v57 = vpop.f32.mrf.mxu1  ;;  %2661 = vmatmul.mubr.msk.bf16.gmra.mxu0 %vm479_vm1, %v3591_v32  ;;  %2676 = vmatmul.mubr.msk.bf16.gmra.mxu1 %vm479_vm1, %v3556_v14 }
 0x212   : > { %v948_v59 = vmax.f32 %v602_v50, 0.0  ;;  %v950_v0 = vmax.f32 %v795_v53, 0.0  ;;  %v606_v3 = vadd.f32 %v605_v34, %v3499_v40  ;;  %v799_v5 = vadd.f32 %v798_v57, %v3535_v61  ;;  %1512 = vmatprep.mubr.bf16.mxu0 %v3158_v15  ;;  %1685 = vmatprep.mubr.bf16.mxu1 %v3158_v15 }
 0x213   : > { %v1059_v4 = vadd.f32 %v1058_v33, %v947_v56  ;;  %v1133_v6 = vadd.f32 %v1132_v35, %v949_v11  ;;  %v607_v7 = vpop.f32.mrf.mxu0  ;;  %v800_v8 = vpop.f32.mrf.mxu1 }
 0x214   : > { %v1096_v13 = vadd.f32 %v1095_v47, %v948_v59  ;;  %v1170_v52 = vadd.f32 %v1169_v48, %v950_v0  ;;  %v951_v63 = vmax.f32 %v606_v3, 0.0  ;;  %v953_v14 = vmax.f32 %v799_v5, 0.0  ;;  %v1275_v48 = vpop.trf.xlu1 }
 0x215   : > { %v608_v19 = vadd.f32 %v607_v7, %v3501_v41  ;;  %v801_v20 = vadd.f32 %v800_v8, %v3540_v1  ;;  %v609_v21 = vpop.f32.mrf.mxu0  ;;  %v802_v22 = vpop.f32.mrf.mxu1 }
 0x216   : > { %v1060_v24 = vadd.f32 %v1059_v4, %v951_v63  ;;  %v1134_v25 = vadd.f32 %v1133_v6, %v953_v14  ;;  %v610_v26 = vadd.f32 %v609_v21, %v3499_v40  ;;  %v803_v27 = vadd.f32 %v802_v22, %v3535_v61 }
 0x217   : > { %v952_v60 = vmax.f32 %v608_v19, 0.0  ;;  %v954_v28 = vmax.f32 %v801_v20, 0.0  ;;  %v611_v29 = vpop.f32.mrf.mxu0  ;;  %v804_v30 = vpop.f32.mrf.mxu1  ;;  %v3624_v6 = vpack.c.bf16 %v1275_v48, %v1274_v16 }
 0x218   : > { %v955_v31 = vmax.f32 %v610_v26, 0.0  ;;  %v957_v33 = vmax.f32 %v803_v27, 0.0  ;;  %v612_v35 = vadd.f32 %v611_v29, %v3501_v41  ;;  %v805_v12 = vadd.f32 %v804_v30, %v3540_v1  ;;  %v2907_v29 = vld [vmem:[#allocation8 + $0x30] sm:$0xff]  }
 0x219   : > { %v1097_v36 = vadd.f32 %v1096_v13, %v952_v60  ;;  %v1171_v37 = vadd.f32 %v1170_v52, %v954_v28  ;;  %v615_v38 = vpop.f32.mrf.mxu0  ;;  %v808_v39 = vpop.f32.mrf.mxu1  ;;  %2662 = vmatmul.mubr.msk.bf16.gmra.mxu0 %vm479_vm1, %v3608_v23  ;;  %2677 = vmatmul.mubr.msk.bf16.gmra.mxu1 %vm479_vm1, %v3572_v54  ;;  %v2906_v28 = vld [vmem:[#allocation8 + $0x70] sm:$0xff]  }
 0x21a   : > { %v1061_v42 = vadd.f32 %v1060_v24, %v955_v31  ;;  %v1135_v44 = vadd.f32 %v1134_v25, %v957_v33  ;;  %v956_v45 = vmax.f32 %v612_v35, 0.0  ;;  %v958_v47 = vmax.f32 %v805_v12, 0.0  ;;  %1522 = vmatprep.mubr.bf16.mxu0 %v3158_v15  ;;  %1695 = vmatprep.mubr.bf16.mxu1 %v3158_v15 }
 0x21b   : > { %v616_v50 = vadd.f32 %v615_v38, %v3499_v40  ;;  %v809_v53 = vadd.f32 %v808_v39, %v3535_v61  ;;  %v617_v56 = vpop.f32.mrf.mxu0  ;;  %v810_v11 = vpop.f32.mrf.mxu1  ;;  %2731 = vmatprep.subr.bf16.mxu0 %v2906_v28 }
 0x21c   : > { %v1098_v34 = vadd.f32 %v1097_v36, %v956_v45  ;;  %v1172_v57 = vadd.f32 %v1171_v37, %v958_v47  ;;  %v618_v59 = vadd.f32 %v617_v56, %v3501_v41  ;;  %v811_v54 = vadd.f32 %v810_v11, %v3540_v1  ;;  %2732 = vmatpush3.bf16.msra.mxu0 %v2907_v29  ;;  %v2908_v45 = vld [vmem:[#allocation8 + $0xf0] sm:$0xff]  }
 0x21d   : > { %v959_v0 = vmax.f32 %v616_v50, 0.0  ;;  %v961_v3 = vmax.f32 %v809_v53, 0.0  ;;  %v619_v5 = vpop.f32.mrf.mxu0  ;;  %v812_v4 = vpop.f32.mrf.mxu1  ;;  %v2909_v47 = vld [vmem:[#allocation8 + $0xb0] sm:$0xff]   ;;  %2753 = vmatprep.subr.bf16.mxu1 %v2908_v45 }
 0x21e   : > { %v960_v7 = vmax.f32 %v618_v59, 0.0  ;;  %v962_v8 = vmax.f32 %v811_v54, 0.0  ;;  %v620_v9 = vadd.f32 %v619_v5, %v3499_v40  ;;  %v813_v10 = vadd.f32 %v812_v4, %v3535_v61  ;;  %2754 = vmatpush3.bf16.msra.mxu1 %v2909_v47 }
 0x21f   : > { %v1062_v13 = vadd.f32 %v1061_v42, %v959_v0  ;;  %v1136_v52 = vadd.f32 %v1135_v44, %v961_v3  ;;  %v621_v63 = vpop.f32.mrf.mxu0  ;;  %v814_v14 = vpop.f32.mrf.mxu1 }
 0x220   : > { %v1099_v17 = vadd.f32 %v1098_v34, %v960_v7  ;;  %v1173_v18 = vadd.f32 %v1172_v57, %v962_v8  ;;  %v963_v19 = vmax.f32 %v620_v9, 0.0  ;;  %v965_v20 = vmax.f32 %v813_v10, 0.0 }
 0x221   : > { %v622_v21 = vadd.f32 %v621_v63, %v3501_v41  ;;  %v815_v22 = vadd.f32 %v814_v14, %v3540_v1  ;;  %v625_v16 = vpop.f32.mrf.mxu0  ;;  %v818_v24 = vpop.f32.mrf.mxu1  ;;  %2663 = vmatmul.mubr.msk.bf16.gmra.mxu0 %vm479_vm1, %v3624_v6  ;;  %2678 = vmatmul.mubr.msk.bf16.gmra.mxu1 %vm479_vm1, %v3591_v32 }
 0x222   : > { %v1063_v25 = vadd.f32 %v1062_v13, %v963_v19  ;;  %v1137_v26 = vadd.f32 %v1136_v52, %v965_v20  ;;  %v626_v27 = vadd.f32 %v625_v16, %v3499_v40  ;;  %v819_v60 = vadd.f32 %v818_v24, %v3535_v61  ;;  %1705 = vmatprep.mubr.bf16.mxu1 %v3158_v15 }
 0x223   : > { %v964_v30 = vmax.f32 %v622_v21, 0.0  ;;  %v966_v31 = vmax.f32 %v815_v22, 0.0  ;;  %v627_v33 = vpop.f32.mrf.mxu0  ;;  %v820_v35 = vpop.f32.mrf.mxu1 }
 0x224   : > { %v967_v12 = vmax.f32 %v626_v27, 0.0  ;;  %v969_v36 = vmax.f32 %v819_v60, 0.0  ;;  %v628_v37 = vadd.f32 %v627_v33, %v3501_v41  ;;  %v821_v32 = vadd.f32 %v820_v35, %v3540_v1 }
 0x225   : > { %v1100_v38 = vadd.f32 %v1099_v17, %v964_v30  ;;  %v1174_v39 = vadd.f32 %v1173_v18, %v966_v31  ;;  %v629_v42 = vpop.f32.mrf.mxu0  ;;  %v822_v44 = vpop.f32.mrf.mxu1 }
 0x226   : > { %v1064_v48 = vadd.f32 %v1063_v25, %v967_v12  ;;  %v1138_v50 = vadd.f32 %v1137_v26, %v969_v36  ;;  %v968_v53 = vmax.f32 %v628_v37, 0.0  ;;  %v970_v56 = vmax.f32 %v821_v32, 0.0 }
 0x227   : > { %v630_v11 = vadd.f32 %v629_v42, %v3499_v40  ;;  %v823_v34 = vadd.f32 %v822_v44, %v3535_v61  ;;  %v631_v57 = vpop.f32.mrf.mxu0  ;;  %v824_v59 = vpop.f32.mrf.mxu1 }
 0x228   : > { %v1101_v54 = vadd.f32 %v1100_v38, %v968_v53  ;;  %v1175_v0 = vadd.f32 %v1174_v39, %v970_v56  ;;  %v632_v3 = vadd.f32 %v631_v57, %v3501_v41  ;;  %v825_v5 = vadd.f32 %v824_v59, %v3540_v1  ;;  %v2911_v53 = vld [vmem:[#allocation8 + $0x28] sm:$0xff]  }
 0x229   : > { %v971_v4 = vmax.f32 %v630_v11, 0.0  ;;  %v973_v7 = vmax.f32 %v823_v34, 0.0  ;;  %v635_v8 = vpop.f32.mrf.mxu0  ;;  %v828_v9 = vpop.f32.mrf.mxu1  ;;  %2679 = vmatmul.mubr.msk.bf16.gmra.mxu1 %vm479_vm1, %v3608_v23 }
 0x22a   : > { %v972_v10 = vmax.f32 %v632_v3, 0.0  ;;  %v974_v13 = vmax.f32 %v825_v5, 0.0  ;;  %v636_v52 = vadd.f32 %v635_v8, %v3499_v40  ;;  %v829_v63 = vadd.f32 %v828_v9, %v3535_v61  ;;  %1715 = vmatprep.mubr.bf16.mxu1 %v3158_v15  ;;  %v2913_v5 = vld [vmem:[#allocation8 + $0xa8] sm:$0xff]  }
 0x22b   : > { %v1065_v14 = vadd.f32 %v1064_v48, %v971_v4  ;;  %v1139_v17 = vadd.f32 %v1138_v50, %v973_v7  ;;  %v637_v18 = vpop.f32.mrf.mxu0  ;;  %v830_v19 = vpop.f32.mrf.mxu1  ;;  %v2910_v50 = vld [vmem:[#allocation8 + $0x68] sm:$0xff]  }
 0x22c   : > { %v1102_v20 = vadd.f32 %v1101_v54, %v972_v10  ;;  %v1176_v21 = vadd.f32 %v1175_v0, %v974_v13  ;;  %v975_v22 = vmax.f32 %v636_v52, 0.0  ;;  %v977_v16 = vmax.f32 %v829_v63, 0.0  ;;  %2733 = vmatprep.subr.bf16.mxu0 %v2910_v50 }
 0x22d   : > { %v638_v24 = vadd.f32 %v637_v18, %v3501_v41  ;;  %v831_v23 = vadd.f32 %v830_v19, %v3540_v1  ;;  %v639_v25 = vpop.f32.mrf.mxu0  ;;  %v832_v26 = vpop.f32.mrf.mxu1  ;;  %2734 = vmatpush3.bf16.msra.mxu0 %v2911_v53 }
 0x22e   : > { %v1066_v27 = vadd.f32 %v1065_v14, %v975_v22  ;;  %v1140_v60 = vadd.f32 %v1139_v17, %v977_v16  ;;  %v640_v28 = vadd.f32 %v639_v25, %v3499_v40  ;;  %v833_v15 = vadd.f32 %v832_v26, %v3535_v61 }
 0x22f   : > { %v976_v29 = vmax.f32 %v638_v24, 0.0  ;;  %v978_v30 = vmax.f32 %v831_v23, 0.0  ;;  %v641_v31 = vpop.f32.mrf.mxu0  ;;  %v834_v33 = vpop.f32.mrf.mxu1 }
 0x230   : > { %v979_v35 = vmax.f32 %v640_v28, 0.0  ;;  %v981_v12 = vmax.f32 %v833_v15, 0.0  ;;  %v642_v36 = vadd.f32 %v641_v31, %v3501_v41  ;;  %v835_v37 = vadd.f32 %v834_v33, %v3540_v1 }
 0x231   : > { %v1103_v32 = vadd.f32 %v1102_v20, %v976_v29  ;;  %v1177_v38 = vadd.f32 %v1176_v21, %v978_v30  ;;  %v645_v39 = vpop.f32.mrf.mxu0  ;;  %v838_v42 = vpop.f32.mrf.mxu1  ;;  %2680 = vmatmul.mubr.msk.bf16.gmra.mxu1 %vm479_vm1, %v3624_v6  ;;  %v2912_v6 = vld [vmem:[#allocation8 + $0xe8] sm:$0xff]  }
 0x232   : > { %v1067_v44 = vadd.f32 %v1066_v27, %v979_v35  ;;  %v1141_v45 = vadd.f32 %v1140_v60, %v981_v12  ;;  %v980_v47 = vmax.f32 %v642_v36, 0.0  ;;  %v982_v48 = vmax.f32 %v835_v37, 0.0  ;;  %2755 = vmatprep.subr.bf16.mxu1 %v2912_v6 }
 0x233   : > { %v646_v56 = vadd.f32 %v645_v39, %v3499_v40  ;;  %v839_v11 = vadd.f32 %v838_v42, %v3535_v61  ;;  %v647_v34 = vpop.f32.mrf.mxu0  ;;  %v840_v57 = vpop.f32.mrf.mxu1  ;;  %2756 = vmatpush3.bf16.msra.mxu1 %v2913_v5 }
 0x234   : > { %v1104_v59 = vadd.f32 %v1103_v32, %v980_v47  ;;  %v1178_v54 = vadd.f32 %v1177_v38, %v982_v48  ;;  %v648_v0 = vadd.f32 %v647_v34, %v3501_v41  ;;  %v841_v3 = vadd.f32 %v840_v57, %v3540_v1 }
 0x235   : > { %v983_v4 = vmax.f32 %v646_v56, 0.0  ;;  %v985_v7 = vmax.f32 %v839_v11, 0.0  ;;  %v649_v8 = vpop.f32.mrf.mxu0  ;;  %v842_v9 = vpop.f32.mrf.mxu1 }
 0x236   : > { %v984_v10 = vmax.f32 %v648_v0, 0.0  ;;  %v986_v13 = vmax.f32 %v841_v3, 0.0  ;;  %v650_v52 = vadd.f32 %v649_v8, %v3499_v40  ;;  %v843_v63 = vadd.f32 %v842_v9, %v3535_v61 }
 0x237   : > { %v1068_v14 = vadd.f32 %v1067_v44, %v983_v4  ;;  %v1142_v17 = vadd.f32 %v1141_v45, %v985_v7  ;;  %v651_v18 = vpop.f32.mrf.mxu0  ;;  %v844_v19 = vpop.f32.mrf.mxu1 }
 0x238   : > { %v1105_v20 = vadd.f32 %v1104_v59, %v984_v10  ;;  %v1179_v21 = vadd.f32 %v1178_v54, %v986_v13  ;;  %v987_v22 = vmax.f32 %v650_v52, 0.0  ;;  %v989_v16 = vmax.f32 %v843_v63, 0.0 }
 0x239   : > { %v652_v24 = vadd.f32 %v651_v18, %v3501_v41  ;;  %v845_v23 = vadd.f32 %v844_v19, %v3540_v1  ;;  %v655_v25 = vpop.f32.mrf.mxu0  ;;  %v848_v26 = vpop.f32.mrf.mxu1 }
 0x23a   : > { %v1069_v27 = vadd.f32 %v1068_v14, %v987_v22  ;;  %v1143_v60 = vadd.f32 %v1142_v17, %v989_v16  ;;  %v656_v28 = vadd.f32 %v655_v25, %v3499_v40  ;;  %v849_v15 = vadd.f32 %v848_v26, %v3535_v61  ;;  %v2914_v14 = vld [vmem:[#allocation8 + $0x60] sm:$0xff]  }
 0x23b   : > { %v988_v29 = vmax.f32 %v652_v24, 0.0  ;;  %v990_v30 = vmax.f32 %v845_v23, 0.0  ;;  %v657_v31 = vpop.f32.mrf.mxu0  ;;  %v850_v33 = vpop.f32.mrf.mxu1  ;;  %v2915_v17 = vld [vmem:[#allocation8 + $0x20] sm:$0xff]   ;;  %2735 = vmatprep.subr.bf16.mxu0 %v2914_v14 }
 0x23c   : > { %v991_v35 = vmax.f32 %v656_v28, 0.0  ;;  %v993_v12 = vmax.f32 %v849_v15, 0.0  ;;  %v658_v36 = vadd.f32 %v657_v31, %v3501_v41  ;;  %v851_v37 = vadd.f32 %v850_v33, %v3540_v1  ;;  %v2916_v22 = vld [vmem:[#allocation8 + $0xe0] sm:$0xff]   ;;  %2736 = vmatpush3.bf16.msra.mxu0 %v2915_v17 }
 0x23d   : > { %v1106_v32 = vadd.f32 %v1105_v20, %v988_v29  ;;  %v1180_v38 = vadd.f32 %v1179_v21, %v990_v30  ;;  %v659_v39 = vpop.f32.mrf.mxu0  ;;  %v852_v42 = vpop.f32.mrf.mxu1  ;;  %v2917_v16 = vld [vmem:[#allocation8 + $0xa0] sm:$0xff]   ;;  %2757 = vmatprep.subr.bf16.mxu1 %v2916_v22 }
 0x23e   : > { %v1070_v44 = vadd.f32 %v1069_v27, %v991_v35  ;;  %v1144_v45 = vadd.f32 %v1143_v60, %v993_v12  ;;  %v992_v47 = vmax.f32 %v658_v36, 0.0  ;;  %v994_v48 = vmax.f32 %v851_v37, 0.0  ;;  %2758 = vmatpush3.bf16.msra.mxu1 %v2917_v16 }
 0x23f   : > { %v660_v50 = vadd.f32 %v659_v39, %v3499_v40  ;;  %v853_v53 = vadd.f32 %v852_v42, %v3535_v61  ;;  %v661_v56 = vpop.f32.mrf.mxu0  ;;  %v854_v11 = vpop.f32.mrf.mxu1 }
 0x240   : > { %v1107_v34 = vadd.f32 %v1106_v32, %v992_v47  ;;  %v1181_v57 = vadd.f32 %v1180_v38, %v994_v48  ;;  %v662_v59 = vadd.f32 %v661_v56, %v3501_v41  ;;  %v855_v54 = vadd.f32 %v854_v11, %v3540_v1 }
 0x241   : > { %v995_v0 = vmax.f32 %v660_v50, 0.0  ;;  %v997_v3 = vmax.f32 %v853_v53, 0.0  ;;  %v665_v6 = vpop.f32.mrf.mxu0  ;;  %v858_v5 = vpop.f32.mrf.mxu1 }
 0x242   : > { %v996_v4 = vmax.f32 %v662_v59, 0.0  ;;  %v998_v7 = vmax.f32 %v855_v54, 0.0  ;;  %v666_v8 = vadd.f32 %v665_v6, %v3499_v40  ;;  %v859_v9 = vadd.f32 %v858_v5, %v3535_v61 }
 0x243   : > { %v1071_v10 = vadd.f32 %v1070_v44, %v995_v0  ;;  %v1145_v13 = vadd.f32 %v1144_v45, %v997_v3  ;;  %v667_v52 = vpop.f32.mrf.mxu0  ;;  %v860_v63 = vpop.f32.mrf.mxu1 }
 0x244   : > { %v1108_v18 = vadd.f32 %v1107_v34, %v996_v4  ;;  %v1182_v19 = vadd.f32 %v1181_v57, %v998_v7  ;;  %v999_v20 = vmax.f32 %v666_v8, 0.0  ;;  %v1001_v21 = vmax.f32 %v859_v9, 0.0 }
 0x245   : > { %v668_v24 = vadd.f32 %v667_v52, %v3501_v41  ;;  %v861_v23 = vadd.f32 %v860_v63, %v3540_v1  ;;  %v669_v25 = vpop.f32.mrf.mxu0  ;;  %v862_v26 = vpop.f32.mrf.mxu1 }
 0x246   : > { %v1072_v27 = vadd.f32 %v1071_v10, %v999_v20  ;;  %v1146_v60 = vadd.f32 %v1145_v13, %v1001_v21  ;;  %v670_v28 = vadd.f32 %v669_v25, %v3499_v40  ;;  %v863_v15 = vadd.f32 %v862_v26, %v3535_v61 }
 0x247   : > { %v1000_v29 = vmax.f32 %v668_v24, 0.0  ;;  %v1002_v30 = vmax.f32 %v861_v23, 0.0  ;;  %v671_v31 = vpop.f32.mrf.mxu0  ;;  %v864_v33 = vpop.f32.mrf.mxu1 }
 0x248   : > { %v1003_v35 = vmax.f32 %v670_v28, 0.0  ;;  %v1005_v12 = vmax.f32 %v863_v15, 0.0  ;;  %v672_v36 = vadd.f32 %v671_v31, %v3501_v41  ;;  %v865_v37 = vadd.f32 %v864_v33, %v3540_v1 }
 0x249   : > { %v1109_v32 = vadd.f32 %v1108_v18, %v1000_v29  ;;  %v1183_v38 = vadd.f32 %v1182_v19, %v1002_v30  ;;  %v675_v39 = vpop.f32.mrf.mxu0  ;;  %v868_v42 = vpop.f32.mrf.mxu1 }
 0x24a   : > { %v1073_v44 = vadd.f32 %v1072_v27, %v1003_v35  ;;  %v1147_v45 = vadd.f32 %v1146_v60, %v1005_v12  ;;  %v1004_v47 = vmax.f32 %v672_v36, 0.0  ;;  %v1006_v48 = vmax.f32 %v865_v37, 0.0  ;;  %v2918_v27 = vld [vmem:[#allocation8 + $0x58] sm:$0xff]  }
 0x24b   : > { %v676_v50 = vadd.f32 %v675_v39, %v3499_v40  ;;  %v869_v53 = vadd.f32 %v868_v42, %v3535_v61  ;;  %v677_v56 = vpop.f32.mrf.mxu0  ;;  %v870_v11 = vpop.f32.mrf.mxu1  ;;  %v2919_v60 = vld [vmem:[#allocation8 + $0x18] sm:$0xff]   ;;  %2737 = vmatprep.subr.bf16.mxu0 %v2918_v27 }
 0x24c   : > { %v1110_v34 = vadd.f32 %v1109_v32, %v1004_v47  ;;  %v1184_v57 = vadd.f32 %v1183_v38, %v1006_v48  ;;  %v678_v59 = vadd.f32 %v677_v56, %v3501_v41  ;;  %v871_v54 = vadd.f32 %v870_v11, %v3540_v1  ;;  %2738 = vmatpush3.bf16.msra.mxu0 %v2919_v60  ;;  %v2920_v39 = vld [vmem:[#allocation8 + $0xd8] sm:$0xff]  }
 0x24d   : > { %v1007_v0 = vmax.f32 %v676_v50, 0.0  ;;  %v1009_v3 = vmax.f32 %v869_v53, 0.0  ;;  %v679_v6 = vpop.f32.mrf.mxu0  ;;  %v872_v5 = vpop.f32.mrf.mxu1  ;;  %v2921_v42 = vld [vmem:[#allocation8 + $0x98] sm:$0xff]   ;;  %2759 = vmatprep.subr.bf16.mxu1 %v2920_v39 }
 0x24e   : > { %v1008_v4 = vmax.f32 %v678_v59, 0.0  ;;  %v1010_v7 = vmax.f32 %v871_v54, 0.0  ;;  %v680_v8 = vadd.f32 %v679_v6, %v3499_v40  ;;  %v873_v9 = vadd.f32 %v872_v5, %v3535_v61  ;;  %2760 = vmatpush3.bf16.msra.mxu1 %v2921_v42 }
 0x24f   : > { %v1074_v10 = vadd.f32 %v1073_v44, %v1007_v0  ;;  %v1148_v13 = vadd.f32 %v1147_v45, %v1009_v3  ;;  %v681_v52 = vpop.f32.mrf.mxu0  ;;  %v874_v63 = vpop.f32.mrf.mxu1 }
 0x250   : > { %v1111_v14 = vadd.f32 %v1110_v34, %v1008_v4  ;;  %v1185_v17 = vadd.f32 %v1184_v57, %v1010_v7  ;;  %v1011_v18 = vmax.f32 %v680_v8, 0.0  ;;  %v1013_v19 = vmax.f32 %v873_v9, 0.0 }
 0x251   : > { %v682_v20 = vadd.f32 %v681_v52, %v3501_v41  ;;  %v875_v21 = vadd.f32 %v874_v63, %v3540_v1  ;;  %v685_v22 = vpop.f32.mrf.mxu0  ;;  %v878_v16 = vpop.f32.mrf.mxu1 }
 0x252   : > { %v1075_v24 = vadd.f32 %v1074_v10, %v1011_v18  ;;  %v1149_v23 = vadd.f32 %v1148_v13, %v1013_v19  ;;  %v686_v25 = vadd.f32 %v685_v22, %v3499_v40  ;;  %v879_v26 = vadd.f32 %v878_v16, %v3535_v61 }
 0x253   : > { %v1012_v28 = vmax.f32 %v682_v20, 0.0  ;;  %v1014_v15 = vmax.f32 %v875_v21, 0.0  ;;  %v687_v29 = vpop.f32.mrf.mxu0  ;;  %v880_v30 = vpop.f32.mrf.mxu1 }
 0x254   : > { %v1015_v31 = vmax.f32 %v686_v25, 0.0  ;;  %v1017_v33 = vmax.f32 %v879_v26, 0.0  ;;  %v688_v35 = vadd.f32 %v687_v29, %v3501_v41  ;;  %v881_v12 = vadd.f32 %v880_v30, %v3540_v1 }
 0x255   : > { %v1112_v36 = vadd.f32 %v1111_v14, %v1012_v28  ;;  %v1186_v37 = vadd.f32 %v1185_v17, %v1014_v15  ;;  %v689_v32 = vpop.f32.mrf.mxu0  ;;  %v882_v38 = vpop.f32.mrf.mxu1 }
 0x256   : > { %v1076_v44 = vadd.f32 %v1075_v24, %v1015_v31  ;;  %v1150_v45 = vadd.f32 %v1149_v23, %v1017_v33  ;;  %v1016_v47 = vmax.f32 %v688_v35, 0.0  ;;  %v1018_v48 = vmax.f32 %v881_v12, 0.0 }
 0x257   : > { %v690_v50 = vadd.f32 %v689_v32, %v3499_v40  ;;  %v883_v53 = vadd.f32 %v882_v38, %v3535_v61  ;;  %v691_v56 = vpop.f32.mrf.mxu0  ;;  %v884_v11 = vpop.f32.mrf.mxu1 }
 0x258   : > { %v1113_v34 = vadd.f32 %v1112_v36, %v1016_v47  ;;  %v1187_v57 = vadd.f32 %v1186_v37, %v1018_v48  ;;  %v692_v59 = vadd.f32 %v691_v56, %v3501_v41  ;;  %v885_v54 = vadd.f32 %v884_v11, %v3540_v1 }
 0x259   : > { %v1019_v0 = vmax.f32 %v690_v50, 0.0  ;;  %v1021_v3 = vmax.f32 %v883_v53, 0.0  ;;  %v695_v6 = vpop.f32.mrf.mxu0  ;;  %v888_v5 = vpop.f32.mrf.mxu1 }
 0x25a   : > { %v1020_v4 = vmax.f32 %v692_v59, 0.0  ;;  %v1022_v7 = vmax.f32 %v885_v54, 0.0  ;;  %v696_v8 = vadd.f32 %v695_v6, %v3499_v40  ;;  %v889_v9 = vadd.f32 %v888_v5, %v3535_v61  ;;  %v2924_v59 = vld [vmem:[#allocation8 + $0xd0] sm:$0xff]  }
 0x25b   : > { %v1077_v10 = vadd.f32 %v1076_v44, %v1019_v0  ;;  %v1151_v13 = vadd.f32 %v1150_v45, %v1021_v3  ;;  %v697_v52 = vpop.f32.mrf.mxu0  ;;  %v890_v63 = vpop.f32.mrf.mxu1  ;;  %v2922_v44 = vld [vmem:[#allocation8 + $0x50] sm:$0xff]   ;;  %2761 = vmatprep.subr.bf16.mxu1 %v2924_v59 }
 0x25c   : > { %v1114_v14 = vadd.f32 %v1113_v34, %v1020_v4  ;;  %v1188_v17 = vadd.f32 %v1187_v57, %v1022_v7  ;;  %v1023_v18 = vmax.f32 %v696_v8, 0.0  ;;  %v1025_v19 = vmax.f32 %v889_v9, 0.0  ;;  %v2923_v45 = vld [vmem:[#allocation8 + $0x10] sm:$0xff]   ;;  %2739 = vmatprep.subr.bf16.mxu0 %v2922_v44 }
 0x25d   : > { %v698_v20 = vadd.f32 %v697_v52, %v3501_v41  ;;  %v891_v21 = vadd.f32 %v890_v63, %v3540_v1  ;;  %v699_v22 = vpop.f32.mrf.mxu0  ;;  %v892_v16 = vpop.f32.mrf.mxu1  ;;  %v2925_v54 = vld [vmem:[#allocation8 + $0x90] sm:$0xff]   ;;  %2740 = vmatpush3.bf16.msra.mxu0 %v2923_v45 }
 0x25e   : > { %v1078_v24 = vadd.f32 %v1077_v10, %v1023_v18  ;;  %v1152_v23 = vadd.f32 %v1151_v13, %v1025_v19  ;;  %v700_v25 = vadd.f32 %v699_v22, %v3499_v40  ;;  %v893_v26 = vadd.f32 %v892_v16, %v3535_v61  ;;  %2762 = vmatpush3.bf16.msra.mxu1 %v2925_v54 }
 0x25f   : > { %v1024_v27 = vmax.f32 %v698_v20, 0.0  ;;  %v1026_v60 = vmax.f32 %v891_v21, 0.0  ;;  %v701_v28 = vpop.f32.mrf.mxu0  ;;  %v894_v15 = vpop.f32.mrf.mxu1  ;;  %v1039_v10 = vmax.f32 %v3506_v43, 0.0  ;;  %v1040_v21 = vmax.f32 %v3511_v46, 0.0 }
 0x260   : > { %v1027_v29 = vmax.f32 %v700_v25, 0.0  ;;  %v1029_v30 = vmax.f32 %v893_v26, 0.0  ;;  %v702_v31 = vadd.f32 %v701_v28, %v3501_v41  ;;  %v895_v33 = vadd.f32 %v894_v15, %v3540_v1 }
 0x261   : > { %v1115_v35 = vadd.f32 %v1114_v14, %v1024_v27  ;;  %v1189_v12 = vadd.f32 %v1188_v17, %v1026_v60  ;;  %v705_v36 = vpop.f32.mrf.mxu0  ;;  %v898_v37 = vpop.f32.mrf.mxu1  ;;  %v1043_v22 = vmax.f32 %v3514_v49, 0.0  ;;  %v1044_v28 = vmax.f32 %v3517_v51, 0.0 }
 0x262   : > { %v1079_v32 = vadd.f32 %v1078_v24, %v1027_v29  ;;  %v1153_v38 = vadd.f32 %v1152_v23, %v1029_v30  ;;  %v1028_v39 = vmax.f32 %v702_v31, 0.0  ;;  %v1030_v42 = vmax.f32 %v895_v33, 0.0 }
 0x263   : > { %v706_v47 = vadd.f32 %v705_v36, %v3499_v40  ;;  %v899_v48 = vadd.f32 %v898_v37, %v3535_v61  ;;  %v707_v50 = vpop.f32.mrf.mxu0  ;;  %v900_v53 = vpop.f32.mrf.mxu1  ;;  %v1047_v15 = vmax.f32 %v3525_v55, 0.0  ;;  %v1048_v31 = vmax.f32 %v3531_v58, 0.0 }
 0x264   : > { %v1116_v56 = vadd.f32 %v1115_v35, %v1028_v39  ;;  %v1190_v11 = vadd.f32 %v1189_v12, %v1030_v42  ;;  %v708_v34 = vadd.f32 %v707_v50, %v3501_v41  ;;  %v901_v57 = vadd.f32 %v900_v53, %v3540_v1 }
 0x265   : > { %v1031_v0 = vmax.f32 %v706_v47, 0.0  ;;  %v1033_v3 = vmax.f32 %v899_v48, 0.0  ;;  %v709_v6 = vpop.f32.mrf.mxu0  ;;  %v902_v5 = vpop.f32.mrf.mxu1  ;;  %v1051_v36 = vmax.f32 %v3538_v62, 0.0  ;;  %v1052_v47 = vmax.f32 %v3543_v2, 0.0 }
 0x266   : > { %v1032_v4 = vmax.f32 %v708_v34, 0.0  ;;  %v1034_v7 = vmax.f32 %v901_v57, 0.0  ;;  %v710_v8 = vadd.f32 %v709_v6, %v3499_v40  ;;  %v903_v9 = vadd.f32 %v902_v5, %v3535_v61 }
 0x267   : > { %v1080_v13 = vadd.f32 %v1079_v32, %v1031_v0  ;;  %v1154_v52 = vadd.f32 %v1153_v38, %v1033_v3  ;;  %v711_v63 = vpop.f32.mrf.mxu0  ;;  %v904_v14 = vpop.f32.mrf.mxu1 }
 0x268   : > { %v1117_v17 = vadd.f32 %v1116_v56, %v1032_v4  ;;  %v1191_v18 = vadd.f32 %v1190_v11, %v1034_v7  ;;  %v1035_v19 = vmax.f32 %v710_v8, 0.0  ;;  %v1037_v20 = vmax.f32 %v903_v9, 0.0 }
 0x269   : > { %v712_v16 = vadd.f32 %v711_v63, %v3501_v41  ;;  %v905_v24 = vadd.f32 %v904_v14, %v3540_v1  ;;  %v908_v23 = vpop.f32.mrf.mxu1  ;;  %v1374_v25 = vpop.f32.mrf.mxu0 }
 0x26a   : > { %v1081_v43 = vadd.f32 %v1080_v13, %v1035_v19  ;;  %v1155_v26 = vadd.f32 %v1154_v52, %v1037_v20  ;;  %v909_v27 = vadd.f32 %v908_v23, %v3535_v61  ;;  %v1375_v60 = vadd.f32 %v1374_v25, %v3499_v40 }
 0x26b   : > { %v1036_v29 = vmax.f32 %v712_v16, 0.0  ;;  %v1038_v46 = vmax.f32 %v905_v24, 0.0  ;;  %v910_v30 = vpop.f32.mrf.mxu1  ;;  %v1376_v49 = vpop.f32.mrf.mxu0 }
 0x26c   : > { %v1082_v33 = vadd.f32 %v1081_v43, %v1039_v10  ;;  %v1041_v35 = vmax.f32 %v909_v27, 0.0  ;;  %v911_v12 = vadd.f32 %v910_v30, %v3540_v1  ;;  %v1377_v38 = vadd.f32 %v1376_v49, %v3501_v41 }
 0x26d   : > { %v1118_v37 = vadd.f32 %v1117_v17, %v1036_v29  ;;  %v1192_v32 = vadd.f32 %v1191_v18, %v1038_v46  ;;  %v912_v39 = vpop.f32.mrf.mxu1  ;;  %v1378_v51 = vpop.f32.mrf.mxu0  ;;  %v1726_v48 = vmax.f32 %v1375_v60, 0.0  ;;  %v2926_v46 = vld [vmem:[#allocation8 + $0x48] sm:$0xff]  }
 0x26e   : > { %v1083_v42 = vadd.f32 %v1082_v33, %v1043_v22  ;;  %v1156_v55 = vadd.f32 %v1155_v26, %v1041_v35  ;;  %v1042_v44 = vmax.f32 %v911_v12, 0.0  ;;  %v913_v45 = vadd.f32 %v912_v39, %v3535_v61  ;;  %v2927_v33 = vld [vmem:[#allocation8 + $0x8] sm:$0xff]   ;;  %2741 = vmatprep.subr.bf16.mxu0 %v2926_v46 }
 0x26f   : > { %v1119_v58 = vadd.f32 %v1118_v37, %v1040_v21  ;;  %v1379_v50 = vadd.f32 %v1378_v51, %v3499_v40  ;;  %v914_v53 = vpop.f32.mrf.mxu1  ;;  %v1380_v56 = vpop.f32.mrf.mxu0  ;;  %v1727_v54 = vmax.f32 %v1377_v38, 0.0  ;;  %v2928_v38 = vld [vmem:[#allocation8 + $0xc8] sm:$0xff]   ;;  %2742 = vmatpush3.bf16.msra.mxu0 %v2927_v33 }
 0x270   : > { %v1084_v62 = vadd.f32 %v1083_v42, %v1047_v15  ;;  %v1193_v11 = vadd.f32 %v1192_v32, %v1042_v44  ;;  %v1045_v34 = vmax.f32 %v913_v45, 0.0  ;;  %v915_v57 = vadd.f32 %v914_v53, %v3540_v1  ;;  %v2929_v39 = vld [vmem:[#allocation8 + $0x88] sm:$0xff]   ;;  %2763 = vmatprep.subr.bf16.mxu1 %v2928_v38 }
 0x271   : > { %v1120_v59 = vadd.f32 %v1119_v58, %v1044_v28  ;;  %v1730_v0 = vmax.f32 %v1379_v50, 0.0  ;;  %v1381_v3 = vadd.f32 %v1380_v56, %v3501_v41  ;;  %v918_v6 = vpop.f32.mrf.mxu1  ;;  %v1384_v5 = vpop.f32.mrf.mxu0  ;;  %v2930_v50 = vld [vmem:[#allocation8 + $0x40] sm:$0xff]   ;;  %2764 = vmatpush3.bf16.msra.mxu1 %v2929_v39 }
 0x272   : > { %v3728_v4 = vadd.f32 %v1084_v62, %v1051_v36  ;;  %v1157_v2 = vadd.f32 %v1156_v55, %v1045_v34  ;;  %v1046_v7 = vmax.f32 %v915_v57, 0.0  ;;  %v919_v8 = vadd.f32 %v918_v6, %v3535_v61  ;;  %v2931_v62 = vld [vmem:[#allocation8] sm:$0xff]   ;;  %2743 = vmatprep.subr.bf16.mxu0 %v2930_v50 }
 0x273   : > { %v1121_v9 = vadd.f32 %v1120_v59, %v1048_v31  ;;  %v1854_v10 = vadd.f32 %v1730_v0, %v1726_v48  ;;  %v1731_v13 = vmax.f32 %v1381_v3, 0.0  ;;  %v1385_v52 = vadd.f32 %v1384_v5, %v3499_v40  ;;  %v920_v63 = vpop.f32.mrf.mxu1  ;;  %v1386_v14 = vpop.f32.mrf.mxu0  ;;  %2744 = vmatpush3.bf16.msra.mxu0 %v2931_v62 }
 0x274   : > { %v1194_v17 = vadd.f32 %v1193_v11, %v1046_v7  ;;  %v1049_v18 = vmax.f32 %v919_v8, 0.0  ;;  %v921_v19 = vadd.f32 %v920_v63, %v3540_v1  ;;  %v1387_v16 = vadd.f32 %v1386_v14, %v3501_v41 }
 0x275   : > { %v3733_v20 = vadd.f32 %v1121_v9, %v1052_v47  ;;  %v1891_v21 = vadd.f32 %v1731_v13, %v1727_v54  ;;  %v1734_v22 = vmax.f32 %v1385_v52, 0.0  ;;  %v922_v24 = vpop.f32.mrf.mxu1  ;;  %v1388_v23 = vpop.f32.mrf.mxu0 }
 0x276   : > { %v1158_v25 = vadd.f32 %v1157_v2, %v1049_v18  ;;  %v1050_v43 = vmax.f32 %v921_v19, 0.0  ;;  %v923_v26 = vadd.f32 %v922_v24, %v3535_v61  ;;  %v1735_v60 = vmax.f32 %v1387_v16, 0.0 }
 0x277   : > { %v1855_v27 = vadd.f32 %v1854_v10, %v1734_v22  ;;  %v1389_v28 = vadd.f32 %v1388_v23, %v3499_v40  ;;  %v924_v15 = vpop.f32.mrf.mxu1  ;;  %v1390_v29 = vpop.f32.mrf.mxu0 }
 0x278   : > { %v1195_v30 = vadd.f32 %v1194_v17, %v1050_v43  ;;  %v1053_v49 = vmax.f32 %v923_v26, 0.0  ;;  %v925_v31 = vadd.f32 %v924_v15, %v3540_v1  ;;  %v1892_v35 = vadd.f32 %v1891_v21, %v1735_v60 }
 0x279   : > { %v1738_v12 = vmax.f32 %v1389_v28, 0.0  ;;  %v1391_v36 = vadd.f32 %v1390_v29, %v3501_v41  ;;  %v1394_v37 = vpop.f32.mrf.mxu0  ;;  %v1567_v32 = vpop.f32.mrf.mxu1 }
 0x27a   : > { %v3740_v51 = vadd.f32 %v1158_v25, %v1053_v49  ;;  %v1054_v42 = vmax.f32 %v925_v31, 0.0  ;;  %v1395_v55 = vadd.f32 %v1394_v37, %v3499_v40  ;;  %v1568_v47 = vadd.f32 %v1567_v32, %v3535_v61 }
 0x27b   : > { %v1856_v44 = vadd.f32 %v1855_v27, %v1738_v12  ;;  %v1739_v45 = vmax.f32 %v1391_v36, 0.0  ;;  %v1396_v58 = vpop.f32.mrf.mxu0  ;;  %v1569_v48 = vpop.f32.mrf.mxu1 }
 0x27c   : > { %v3744_v53 = vadd.f32 %v1195_v30, %v1054_v42  ;;  %v1742_v56 = vmax.f32 %v1395_v55, 0.0  ;;  %v1397_v34 = vadd.f32 %v1396_v58, %v3501_v41  ;;  %v1570_v57 = vadd.f32 %v1569_v48, %v3540_v1 }
 0x27d   : > { %v1893_v11 = vadd.f32 %v1892_v35, %v1739_v45  ;;  %v1398_v59 = vpop.f32.mrf.mxu0  ;;  %v1571_v54 = vpop.f32.mrf.mxu1  ;;  %v1728_v10 = vmax.f32 %v1568_v47, 0.0 }
 0x27e   : > { %v1857_v0 = vadd.f32 %v1856_v44, %v1742_v56  ;;  %v1743_v3 = vmax.f32 %v1397_v34, 0.0  ;;  %v1399_v6 = vadd.f32 %v1398_v59, %v3499_v40  ;;  %v1572_v5 = vadd.f32 %v1571_v54, %v3535_v61  ;;  %v2932_v54 = vld [vmem:[#allocation8 + $0xc0] sm:$0xff]  }
 0x27f   : > { %v1400_v2 = vpop.f32.mrf.mxu0  ;;  %v1573_v7 = vpop.f32.mrf.mxu1  ;;  %v1729_v18 = vmax.f32 %v1570_v57, 0.0  ;;  %2765 = vmatprep.subr.bf16.mxu1 %v2932_v54 }
 0x280   : > { %v1401_v8 = vadd.f32 %v1400_v2, %v3501_v41  ;;  %v1574_v9 = vadd.f32 %v1573_v7, %v3540_v1  ;;  %v1894_v13 = vadd.f32 %v1893_v11, %v1743_v3  ;;  %v1746_v52 = vmax.f32 %v1399_v6, 0.0 }
 0x281   : > { %v1732_v63 = vmax.f32 %v1572_v5, 0.0  ;;  %v1404_v14 = vpop.f32.mrf.mxu0  ;;  %v1577_v17 = vpop.f32.mrf.mxu1 }
 0x282   : > { %v1747_v19 = vmax.f32 %v1401_v8, 0.0  ;;  %v1733_v21 = vmax.f32 %v1574_v9, 0.0  ;;  %v1858_v22 = vadd.f32 %v1857_v0, %v1746_v52  ;;  %v1405_v24 = vadd.f32 %v1404_v14, %v3499_v40  ;;  %v2933_v0 = vld [vmem:[#allocation8 + $0x80] sm:$0xff]  }
 0x283   : > { %v1928_v16 = vadd.f32 %v1732_v63, %v1728_v10  ;;  %v1578_v23 = vadd.f32 %v1577_v17, %v3535_v61  ;;  %v1406_v25 = vpop.f32.mrf.mxu0  ;;  %v1579_v43 = vpop.f32.mrf.mxu1  ;;  %2766 = vmatpush3.bf16.msra.mxu1 %v2933_v0 }
 0x284   : > { %v1895_v26 = vadd.f32 %v1894_v13, %v1747_v19  ;;  %v1965_v27 = vadd.f32 %v1733_v21, %v1729_v18  ;;  %v1750_v60 = vmax.f32 %v1405_v24, 0.0  ;;  %v1407_v15 = vadd.f32 %v1406_v25, %v3501_v41 }
 0x285   : > { %v1736_v28 = vmax.f32 %v1578_v23, 0.0  ;;  %v1580_v29 = vadd.f32 %v1579_v43, %v3540_v1  ;;  %v1408_v46 = vpop.f32.mrf.mxu0  ;;  %v1581_v30 = vpop.f32.mrf.mxu1 }
 0x286   : > { %v1409_v49 = vadd.f32 %v1408_v46, %v3499_v40  ;;  %v1582_v31 = vadd.f32 %v1581_v30, %v3535_v61  ;;  %v1859_v33 = vadd.f32 %v1858_v22, %v1750_v60  ;;  %v1751_v12 = vmax.f32 %v1407_v15, 0.0 }
 0x287   : > { %v1929_v35 = vadd.f32 %v1928_v16, %v1736_v28  ;;  %v1737_v36 = vmax.f32 %v1580_v29, 0.0  ;;  %v1410_v37 = vpop.f32.mrf.mxu0  ;;  %v1583_v32 = vpop.f32.mrf.mxu1  ;;  %v3159_v46 = vmov 0.0  }
 0x288   : > { %v1754_v38 = vmax.f32 %v1409_v49, 0.0  ;;  %v1740_v39 = vmax.f32 %v1582_v31, 0.0  ;;  %v1896_v42 = vadd.f32 %v1895_v26, %v1751_v12  ;;  %v1411_v44 = vadd.f32 %v1410_v37, %v3501_v41  ;;  %2782 = vmatprep.subr.bf16.mxu0 %v3159_v46 }
 0x289   : > { %v1966_v55 = vadd.f32 %v1965_v27, %v1737_v36  ;;  %v1584_v45 = vadd.f32 %v1583_v32, %v3540_v1  ;;  %v1414_v47 = vpop.f32.mrf.mxu0  ;;  %v1587_v58 = vpop.f32.mrf.mxu1 }
 0x28a   : > { %v1860_v48 = vadd.f32 %v1859_v33, %v1754_v38  ;;  %v1930_v50 = vadd.f32 %v1929_v35, %v1740_v39  ;;  %v1415_v56 = vadd.f32 %v1414_v47, %v3499_v40  ;;  %v1588_v62 = vadd.f32 %v1587_v58, %v3535_v61 }
 0x28b   : > { %v1755_v11 = vmax.f32 %v1411_v44, 0.0  ;;  %v1741_v34 = vmax.f32 %v1584_v45, 0.0  ;;  %v1416_v57 = vpop.f32.mrf.mxu0  ;;  %v1589_v59 = vpop.f32.mrf.mxu1 }
 0x28c   : > { %v1758_v3 = vmax.f32 %v1415_v56, 0.0  ;;  %v1744_v6 = vmax.f32 %v1588_v62, 0.0  ;;  %v1417_v5 = vadd.f32 %v1416_v57, %v3501_v41  ;;  %v1590_v2 = vadd.f32 %v1589_v59, %v3540_v1 }
 0x28d   : > { %v1897_v7 = vadd.f32 %v1896_v42, %v1755_v11  ;;  %v1967_v8 = vadd.f32 %v1966_v55, %v1741_v34  ;;  %v1418_v9 = vpop.f32.mrf.mxu0  ;;  %v1591_v10 = vpop.f32.mrf.mxu1 }
 0x28e   : > { %v1861_v13 = vadd.f32 %v1860_v48, %v1758_v3  ;;  %v1931_v52 = vadd.f32 %v1930_v50, %v1744_v6  ;;  %v1759_v63 = vmax.f32 %v1417_v5, 0.0  ;;  %v1745_v14 = vmax.f32 %v1590_v2, 0.0 }
 0x28f   : > { %v1419_v17 = vadd.f32 %v1418_v9, %v3499_v40  ;;  %v1592_v18 = vadd.f32 %v1591_v10, %v3535_v61  ;;  %v1420_v19 = vpop.f32.mrf.mxu0  ;;  %v1593_v21 = vpop.f32.mrf.mxu1 }
 0x290   : > { %v1898_v22 = vadd.f32 %v1897_v7, %v1759_v63  ;;  %v1968_v16 = vadd.f32 %v1967_v8, %v1745_v14  ;;  %v1421_v24 = vadd.f32 %v1420_v19, %v3501_v41  ;;  %v1594_v23 = vadd.f32 %v1593_v21, %v3540_v1 }
 0x291   : > { %v1762_v25 = vmax.f32 %v1419_v17, 0.0  ;;  %v1748_v43 = vmax.f32 %v1592_v18, 0.0  ;;  %v1424_v26 = vpop.f32.mrf.mxu0  ;;  %v1597_v27 = vpop.f32.mrf.mxu1 }
 0x292   : > { %v1763_v60 = vmax.f32 %v1421_v24, 0.0  ;;  %v1749_v28 = vmax.f32 %v1594_v23, 0.0  ;;  %v1425_v15 = vadd.f32 %v1424_v26, %v3499_v40  ;;  %v1598_v29 = vadd.f32 %v1597_v27, %v3535_v61 }
 0x293   : > { %v1862_v30 = vadd.f32 %v1861_v13, %v1762_v25  ;;  %v1932_v49 = vadd.f32 %v1931_v52, %v1748_v43  ;;  %v1426_v31 = vpop.f32.mrf.mxu0  ;;  %v1599_v33 = vpop.f32.mrf.mxu1 }
 0x294   : > { %v1899_v35 = vadd.f32 %v1898_v22, %v1763_v60  ;;  %v1969_v12 = vadd.f32 %v1968_v16, %v1749_v28  ;;  %v1766_v36 = vmax.f32 %v1425_v15, 0.0  ;;  %v1752_v37 = vmax.f32 %v1598_v29, 0.0 }
 0x295   : > { %v1427_v32 = vadd.f32 %v1426_v31, %v3501_v41  ;;  %v1600_v38 = vadd.f32 %v1599_v33, %v3540_v1  ;;  %v1428_v39 = vpop.f32.mrf.mxu0  ;;  %v1601_v42 = vpop.f32.mrf.mxu1 }
 0x296   : > { %v1863_v55 = vadd.f32 %v1862_v30, %v1766_v36  ;;  %v1933_v44 = vadd.f32 %v1932_v49, %v1752_v37  ;;  %v1429_v45 = vadd.f32 %v1428_v39, %v3499_v40  ;;  %v1602_v47 = vadd.f32 %v1601_v42, %v3535_v61 }
 0x297   : > { %v1767_v58 = vmax.f32 %v1427_v32, 0.0  ;;  %v1753_v48 = vmax.f32 %v1600_v38, 0.0  ;;  %v1430_v50 = vpop.f32.mrf.mxu0  ;;  %v1603_v56 = vpop.f32.mrf.mxu1 }
 0x298   : > { %v1770_v62 = vmax.f32 %v1429_v45, 0.0  ;;  %v1756_v11 = vmax.f32 %v1602_v47, 0.0  ;;  %v1431_v34 = vadd.f32 %v1430_v50, %v3501_v41  ;;  %v1604_v57 = vadd.f32 %v1603_v56, %v3540_v1 }
 0x299   : > { %v1900_v59 = vadd.f32 %v1899_v35, %v1767_v58  ;;  %v1970_v54 = vadd.f32 %v1969_v12, %v1753_v48  ;;  %v1434_v0 = vpop.f32.mrf.mxu0  ;;  %v1607_v3 = vpop.f32.mrf.mxu1 }
 0x29a   : > { %v1864_v6 = vadd.f32 %v1863_v55, %v1770_v62  ;;  %v1934_v5 = vadd.f32 %v1933_v44, %v1756_v11  ;;  %v1771_v2 = vmax.f32 %v1431_v34, 0.0  ;;  %v1757_v7 = vmax.f32 %v1604_v57, 0.0 }
 0x29b   : > { %v1435_v8 = vadd.f32 %v1434_v0, %v3499_v40  ;;  %v1608_v9 = vadd.f32 %v1607_v3, %v3535_v61  ;;  %v1436_v10 = vpop.f32.mrf.mxu0  ;;  %v1609_v13 = vpop.f32.mrf.mxu1 }
 0x29c   : > { %v1901_v52 = vadd.f32 %v1900_v59, %v1771_v2  ;;  %v1971_v63 = vadd.f32 %v1970_v54, %v1757_v7  ;;  %v1437_v14 = vadd.f32 %v1436_v10, %v3501_v41  ;;  %v1610_v17 = vadd.f32 %v1609_v13, %v3540_v1 }
 0x29d   : > { %v1774_v18 = vmax.f32 %v1435_v8, 0.0  ;;  %v1760_v19 = vmax.f32 %v1608_v9, 0.0  ;;  %v1438_v21 = vpop.f32.mrf.mxu0  ;;  %v1611_v22 = vpop.f32.mrf.mxu1 }
 0x29e   : > { %v1775_v16 = vmax.f32 %v1437_v14, 0.0  ;;  %v1761_v24 = vmax.f32 %v1610_v17, 0.0  ;;  %v1439_v23 = vadd.f32 %v1438_v21, %v3499_v40  ;;  %v1612_v25 = vadd.f32 %v1611_v22, %v3535_v61 }
 0x29f   : > { %v1865_v43 = vadd.f32 %v1864_v6, %v1774_v18  ;;  %v1935_v26 = vadd.f32 %v1934_v5, %v1760_v19  ;;  %v1440_v27 = vpop.f32.mrf.mxu0  ;;  %v1613_v60 = vpop.f32.mrf.mxu1 }
 0x2a0   : > { %v1902_v28 = vadd.f32 %v1901_v52, %v1775_v16  ;;  %v1972_v15 = vadd.f32 %v1971_v63, %v1761_v24  ;;  %v1778_v29 = vmax.f32 %v1439_v23, 0.0  ;;  %v1764_v30 = vmax.f32 %v1612_v25, 0.0 }
 0x2a1   : > { %v1441_v49 = vadd.f32 %v1440_v27, %v3501_v41  ;;  %v1614_v31 = vadd.f32 %v1613_v60, %v3540_v1  ;;  %v1444_v33 = vpop.f32.mrf.mxu0  ;;  %v1617_v35 = vpop.f32.mrf.mxu1 }
 0x2a2   : > { %v1866_v12 = vadd.f32 %v1865_v43, %v1778_v29  ;;  %v1936_v36 = vadd.f32 %v1935_v26, %v1764_v30  ;;  %v1445_v37 = vadd.f32 %v1444_v33, %v3499_v40  ;;  %v1618_v32 = vadd.f32 %v1617_v35, %v3535_v61 }
 0x2a3   : > { %v1779_v38 = vmax.f32 %v1441_v49, 0.0  ;;  %v1765_v39 = vmax.f32 %v1614_v31, 0.0  ;;  %v1446_v42 = vpop.f32.mrf.mxu0  ;;  %v1619_v55 = vpop.f32.mrf.mxu1 }
 0x2a4   : > { %v1782_v44 = vmax.f32 %v1445_v37, 0.0  ;;  %v1768_v45 = vmax.f32 %v1618_v32, 0.0  ;;  %v1447_v47 = vadd.f32 %v1446_v42, %v3501_v41  ;;  %v1620_v58 = vadd.f32 %v1619_v55, %v3540_v1 }
 0x2a5   : > { %v1903_v48 = vadd.f32 %v1902_v28, %v1779_v38  ;;  %v1973_v50 = vadd.f32 %v1972_v15, %v1765_v39  ;;  %v1448_v56 = vpop.f32.mrf.mxu0  ;;  %v1621_v62 = vpop.f32.mrf.mxu1 }
 0x2a6   : > { %v1867_v11 = vadd.f32 %v1866_v12, %v1782_v44  ;;  %v1937_v34 = vadd.f32 %v1936_v36, %v1768_v45  ;;  %v1783_v57 = vmax.f32 %v1447_v47, 0.0  ;;  %v1769_v59 = vmax.f32 %v1620_v58, 0.0 }
 0x2a7   : > { %v1449_v54 = vadd.f32 %v1448_v56, %v3499_v40  ;;  %v1622_v0 = vadd.f32 %v1621_v62, %v3535_v61  ;;  %v1450_v3 = vpop.f32.mrf.mxu0  ;;  %v1623_v6 = vpop.f32.mrf.mxu1 }
 0x2a8   : > { %v1904_v5 = vadd.f32 %v1903_v48, %v1783_v57  ;;  %v1974_v2 = vadd.f32 %v1973_v50, %v1769_v59  ;;  %v1451_v7 = vadd.f32 %v1450_v3, %v3501_v41  ;;  %v1624_v8 = vadd.f32 %v1623_v6, %v3540_v1 }
 0x2a9   : > { %v1786_v9 = vmax.f32 %v1449_v54, 0.0  ;;  %v1772_v10 = vmax.f32 %v1622_v0, 0.0  ;;  %v1454_v13 = vpop.f32.mrf.mxu0  ;;  %v1627_v52 = vpop.f32.mrf.mxu1 }
 0x2aa   : > { %v1787_v63 = vmax.f32 %v1451_v7, 0.0  ;;  %v1773_v14 = vmax.f32 %v1624_v8, 0.0  ;;  %v1455_v17 = vadd.f32 %v1454_v13, %v3499_v40  ;;  %v1628_v18 = vadd.f32 %v1627_v52, %v3535_v61 }
 0x2ab   : > { %v1868_v19 = vadd.f32 %v1867_v11, %v1786_v9  ;;  %v1938_v21 = vadd.f32 %v1937_v34, %v1772_v10  ;;  %v1456_v22 = vpop.f32.mrf.mxu0  ;;  %v1629_v16 = vpop.f32.mrf.mxu1 }
 0x2ac   : > { %v1905_v24 = vadd.f32 %v1904_v5, %v1787_v63  ;;  %v1975_v23 = vadd.f32 %v1974_v2, %v1773_v14  ;;  %v1790_v25 = vmax.f32 %v1455_v17, 0.0  ;;  %v1776_v43 = vmax.f32 %v1628_v18, 0.0 }
 0x2ad   : > { %v1457_v26 = vadd.f32 %v1456_v22, %v3501_v41  ;;  %v1630_v27 = vadd.f32 %v1629_v16, %v3540_v1  ;;  %v1458_v60 = vpop.f32.mrf.mxu0  ;;  %v1631_v28 = vpop.f32.mrf.mxu1 }
 0x2ae   : > { %v1869_v15 = vadd.f32 %v1868_v19, %v1790_v25  ;;  %v1939_v29 = vadd.f32 %v1938_v21, %v1776_v43  ;;  %v1459_v30 = vadd.f32 %v1458_v60, %v3499_v40  ;;  %v1632_v49 = vadd.f32 %v1631_v28, %v3535_v61 }
 0x2af   : > { %v1791_v31 = vmax.f32 %v1457_v26, 0.0  ;;  %v1777_v33 = vmax.f32 %v1630_v27, 0.0  ;;  %v1460_v35 = vpop.f32.mrf.mxu0  ;;  %v1633_v12 = vpop.f32.mrf.mxu1 }
 0x2b0   : > { %v1794_v36 = vmax.f32 %v1459_v30, 0.0  ;;  %v1780_v37 = vmax.f32 %v1632_v49, 0.0  ;;  %v1461_v32 = vadd.f32 %v1460_v35, %v3501_v41  ;;  %v1634_v38 = vadd.f32 %v1633_v12, %v3540_v1 }
 0x2b1   : > { %v1906_v39 = vadd.f32 %v1905_v24, %v1791_v31  ;;  %v1976_v42 = vadd.f32 %v1975_v23, %v1777_v33  ;;  %v1464_v55 = vpop.f32.mrf.mxu0  ;;  %v1637_v44 = vpop.f32.mrf.mxu1 }
 0x2b2   : > { %v1870_v45 = vadd.f32 %v1869_v15, %v1794_v36  ;;  %v1940_v47 = vadd.f32 %v1939_v29, %v1780_v37  ;;  %v1795_v58 = vmax.f32 %v1461_v32, 0.0  ;;  %v1781_v48 = vmax.f32 %v1634_v38, 0.0 }
 0x2b3   : > { %v1465_v50 = vadd.f32 %v1464_v55, %v3499_v40  ;;  %v1638_v56 = vadd.f32 %v1637_v44, %v3535_v61  ;;  %v1466_v62 = vpop.f32.mrf.mxu0  ;;  %v1639_v11 = vpop.f32.mrf.mxu1 }
 0x2b4   : > { %v1907_v34 = vadd.f32 %v1906_v39, %v1795_v58  ;;  %v1977_v57 = vadd.f32 %v1976_v42, %v1781_v48  ;;  %v1467_v59 = vadd.f32 %v1466_v62, %v3501_v41  ;;  %v1640_v54 = vadd.f32 %v1639_v11, %v3540_v1 }
 0x2b5   : > { %v1798_v0 = vmax.f32 %v1465_v50, 0.0  ;;  %v1784_v3 = vmax.f32 %v1638_v56, 0.0  ;;  %v1468_v6 = vpop.f32.mrf.mxu0  ;;  %v1641_v5 = vpop.f32.mrf.mxu1 }
 0x2b6   : > { %v1799_v2 = vmax.f32 %v1467_v59, 0.0  ;;  %v1785_v7 = vmax.f32 %v1640_v54, 0.0  ;;  %v1469_v8 = vadd.f32 %v1468_v6, %v3499_v40  ;;  %v1642_v9 = vadd.f32 %v1641_v5, %v3535_v61 }
 0x2b7   : > { %v1871_v10 = vadd.f32 %v1870_v45, %v1798_v0  ;;  %v1941_v13 = vadd.f32 %v1940_v47, %v1784_v3  ;;  %v1470_v52 = vpop.f32.mrf.mxu0  ;;  %v1643_v63 = vpop.f32.mrf.mxu1 }
 0x2b8   : > { %v1908_v14 = vadd.f32 %v1907_v34, %v1799_v2  ;;  %v1978_v17 = vadd.f32 %v1977_v57, %v1785_v7  ;;  %v1802_v18 = vmax.f32 %v1469_v8, 0.0  ;;  %v1788_v19 = vmax.f32 %v1642_v9, 0.0 }
 0x2b9   : > { %v1471_v21 = vadd.f32 %v1470_v52, %v3501_v41  ;;  %v1644_v22 = vadd.f32 %v1643_v63, %v3540_v1  ;;  %v1474_v16 = vpop.f32.mrf.mxu0  ;;  %v1647_v24 = vpop.f32.mrf.mxu1 }
 0x2ba   : > { %v1872_v23 = vadd.f32 %v1871_v10, %v1802_v18  ;;  %v1942_v25 = vadd.f32 %v1941_v13, %v1788_v19  ;;  %v1475_v43 = vadd.f32 %v1474_v16, %v3499_v40  ;;  %v1648_v26 = vadd.f32 %v1647_v24, %v3535_v61 }
 0x2bb   : > { %v1803_v27 = vmax.f32 %v1471_v21, 0.0  ;;  %v1789_v60 = vmax.f32 %v1644_v22, 0.0  ;;  %v1476_v28 = vpop.f32.mrf.mxu0  ;;  %v1649_v15 = vpop.f32.mrf.mxu1 }
 0x2bc   : > { %v1806_v29 = vmax.f32 %v1475_v43, 0.0  ;;  %v1792_v30 = vmax.f32 %v1648_v26, 0.0  ;;  %v1477_v49 = vadd.f32 %v1476_v28, %v3501_v41  ;;  %v1650_v31 = vadd.f32 %v1649_v15, %v3540_v1 }
 0x2bd   : > { %v1909_v33 = vadd.f32 %v1908_v14, %v1803_v27  ;;  %v1979_v35 = vadd.f32 %v1978_v17, %v1789_v60  ;;  %v1478_v12 = vpop.f32.mrf.mxu0  ;;  %v1651_v36 = vpop.f32.mrf.mxu1 }
 0x2be   : > { %v1873_v37 = vadd.f32 %v1872_v23, %v1806_v29  ;;  %v1943_v32 = vadd.f32 %v1942_v25, %v1792_v30  ;;  %v1807_v38 = vmax.f32 %v1477_v49, 0.0  ;;  %v1793_v39 = vmax.f32 %v1650_v31, 0.0 }
 0x2bf   : > { %v1479_v42 = vadd.f32 %v1478_v12, %v3499_v40  ;;  %v1652_v55 = vadd.f32 %v1651_v36, %v3535_v61  ;;  %v1480_v44 = vpop.f32.mrf.mxu0  ;;  %v1653_v45 = vpop.f32.mrf.mxu1 }
 0x2c0   : > { %v1910_v47 = vadd.f32 %v1909_v33, %v1807_v38  ;;  %v1980_v58 = vadd.f32 %v1979_v35, %v1793_v39  ;;  %v1481_v48 = vadd.f32 %v1480_v44, %v3501_v41  ;;  %v1654_v50 = vadd.f32 %v1653_v45, %v3540_v1 }
 0x2c1   : > { %v1810_v56 = vmax.f32 %v1479_v42, 0.0  ;;  %v1796_v62 = vmax.f32 %v1652_v55, 0.0  ;;  %v1484_v11 = vpop.f32.mrf.mxu0  ;;  %v1657_v34 = vpop.f32.mrf.mxu1 }
 0x2c2   : > { %v1811_v57 = vmax.f32 %v1481_v48, 0.0  ;;  %v1797_v59 = vmax.f32 %v1654_v50, 0.0  ;;  %v1485_v54 = vadd.f32 %v1484_v11, %v3499_v40  ;;  %v1658_v0 = vadd.f32 %v1657_v34, %v3535_v61 }
 0x2c3   : > { %v1874_v3 = vadd.f32 %v1873_v37, %v1810_v56  ;;  %v1944_v6 = vadd.f32 %v1943_v32, %v1796_v62  ;;  %v1486_v5 = vpop.f32.mrf.mxu0  ;;  %v1659_v2 = vpop.f32.mrf.mxu1 }
 0x2c4   : > { %v1911_v7 = vadd.f32 %v1910_v47, %v1811_v57  ;;  %v1981_v8 = vadd.f32 %v1980_v58, %v1797_v59  ;;  %v1814_v9 = vmax.f32 %v1485_v54, 0.0  ;;  %v1800_v10 = vmax.f32 %v1658_v0, 0.0 }
 0x2c5   : > { %v1487_v13 = vadd.f32 %v1486_v5, %v3501_v41  ;;  %v1660_v52 = vadd.f32 %v1659_v2, %v3540_v1  ;;  %v1488_v63 = vpop.f32.mrf.mxu0  ;;  %v1661_v14 = vpop.f32.mrf.mxu1 }
 0x2c6   : > { %v1875_v17 = vadd.f32 %v1874_v3, %v1814_v9  ;;  %v1945_v18 = vadd.f32 %v1944_v6, %v1800_v10  ;;  %v1489_v19 = vadd.f32 %v1488_v63, %v3499_v40  ;;  %v1662_v21 = vadd.f32 %v1661_v14, %v3535_v61 }
 0x2c7   : > { %v1815_v22 = vmax.f32 %v1487_v13, 0.0  ;;  %v1801_v16 = vmax.f32 %v1660_v52, 0.0  ;;  %v1490_v24 = vpop.f32.mrf.mxu0  ;;  %v1663_v23 = vpop.f32.mrf.mxu1 }
 0x2c8   : > { %v1818_v25 = vmax.f32 %v1489_v19, 0.0  ;;  %v1804_v43 = vmax.f32 %v1662_v21, 0.0  ;;  %v1491_v26 = vadd.f32 %v1490_v24, %v3501_v41  ;;  %v1664_v27 = vadd.f32 %v1663_v23, %v3540_v1 }
 0x2c9   : > { %v1912_v60 = vadd.f32 %v1911_v7, %v1815_v22  ;;  %v1982_v28 = vadd.f32 %v1981_v8, %v1801_v16  ;;  %v1494_v15 = vpop.f32.mrf.mxu0  ;;  %v1667_v29 = vpop.f32.mrf.mxu1 }
 0x2ca   : > { %v1876_v30 = vadd.f32 %v1875_v17, %v1818_v25  ;;  %v1946_v49 = vadd.f32 %v1945_v18, %v1804_v43  ;;  %v1819_v31 = vmax.f32 %v1491_v26, 0.0  ;;  %v1805_v33 = vmax.f32 %v1664_v27, 0.0 }
 0x2cb   : > { %v1495_v35 = vadd.f32 %v1494_v15, %v3499_v40  ;;  %v1668_v12 = vadd.f32 %v1667_v29, %v3535_v61  ;;  %v1496_v36 = vpop.f32.mrf.mxu0  ;;  %v1669_v37 = vpop.f32.mrf.mxu1 }
 0x2cc   : > { %v1913_v32 = vadd.f32 %v1912_v60, %v1819_v31  ;;  %v1983_v38 = vadd.f32 %v1982_v28, %v1805_v33  ;;  %v1497_v39 = vadd.f32 %v1496_v36, %v3501_v41  ;;  %v1670_v42 = vadd.f32 %v1669_v37, %v3540_v1 }
 0x2cd   : > { %v1822_v55 = vmax.f32 %v1495_v35, 0.0  ;;  %v1808_v44 = vmax.f32 %v1668_v12, 0.0  ;;  %v1498_v45 = vpop.f32.mrf.mxu0  ;;  %v1671_v47 = vpop.f32.mrf.mxu1 }
 0x2ce   : > { %v1823_v58 = vmax.f32 %v1497_v39, 0.0  ;;  %v1809_v48 = vmax.f32 %v1670_v42, 0.0  ;;  %v1499_v50 = vadd.f32 %v1498_v45, %v3499_v40  ;;  %v1672_v56 = vadd.f32 %v1671_v47, %v3535_v61 }
 0x2cf   : > { %v1877_v62 = vadd.f32 %v1876_v30, %v1822_v55  ;;  %v1947_v11 = vadd.f32 %v1946_v49, %v1808_v44  ;;  %v1500_v34 = vpop.f32.mrf.mxu0  ;;  %v1673_v57 = vpop.f32.mrf.mxu1 }
 0x2d0   : > { %v1914_v59 = vadd.f32 %v1913_v32, %v1823_v58  ;;  %v1984_v54 = vadd.f32 %v1983_v38, %v1809_v48  ;;  %v1826_v0 = vmax.f32 %v1499_v50, 0.0  ;;  %v1812_v3 = vmax.f32 %v1672_v56, 0.0 }
 0x2d1   : > { %v1501_v6 = vadd.f32 %v1500_v34, %v3501_v41  ;;  %v1674_v5 = vadd.f32 %v1673_v57, %v3540_v1  ;;  %v1504_v2 = vpop.f32.mrf.mxu0  ;;  %v1677_v7 = vpop.f32.mrf.mxu1 }
 0x2d2   : > { %v1878_v8 = vadd.f32 %v1877_v62, %v1826_v0  ;;  %v1948_v9 = vadd.f32 %v1947_v11, %v1812_v3  ;;  %v1505_v10 = vadd.f32 %v1504_v2, %v3499_v40  ;;  %v1678_v13 = vadd.f32 %v1677_v7, %v3535_v61 }
 0x2d3   : > { %v1827_v52 = vmax.f32 %v1501_v6, 0.0  ;;  %v1813_v63 = vmax.f32 %v1674_v5, 0.0  ;;  %v1506_v14 = vpop.f32.mrf.mxu0  ;;  %v1679_v17 = vpop.f32.mrf.mxu1  ;;  %v1086_v5 = vrot.slane %v3728_v4, 4 }
 0x2d4   : > { %v1830_v18 = vmax.f32 %v1505_v10, 0.0  ;;  %v1816_v19 = vmax.f32 %v1678_v13, 0.0  ;;  %v1507_v21 = vadd.f32 %v1506_v14, %v3501_v41  ;;  %v1680_v22 = vadd.f32 %v1679_v17, %v3540_v1 }
 0x2d5   : > { %v1915_v16 = vadd.f32 %v1914_v59, %v1827_v52  ;;  %v1985_v24 = vadd.f32 %v1984_v54, %v1813_v63  ;;  %v1508_v23 = vpop.f32.mrf.mxu0  ;;  %v1681_v25 = vpop.f32.mrf.mxu1 }
 0x2d6   : > { %v1879_v43 = vadd.f32 %v1878_v8, %v1830_v18  ;;  %v1949_v26 = vadd.f32 %v1948_v9, %v1816_v19  ;;  %v1831_v27 = vmax.f32 %v1507_v21, 0.0  ;;  %v1817_v60 = vmax.f32 %v1680_v22, 0.0 }
 0x2d7   : > { %v1509_v28 = vadd.f32 %v1508_v23, %v3499_v40  ;;  %v1682_v15 = vadd.f32 %v1681_v25, %v3535_v61  ;;  %v1510_v29 = vpop.f32.mrf.mxu0  ;;  %v1683_v30 = vpop.f32.mrf.mxu1  ;;  %v1087_v23 = vadd.f32 %v1086_v5, %v3728_v4  ;;  %v1123_v25 = vrot.slane %v3733_v20, 4 }
 0x2d8   : > { %v1916_v49 = vadd.f32 %v1915_v16, %v1831_v27  ;;  %v1986_v31 = vadd.f32 %v1985_v24, %v1817_v60  ;;  %v1511_v33 = vadd.f32 %v1510_v29, %v3501_v41  ;;  %v1684_v35 = vadd.f32 %v1683_v30, %v3540_v1 }
 0x2d9   : > { %v1834_v12 = vmax.f32 %v1509_v28, 0.0  ;;  %v1820_v36 = vmax.f32 %v1682_v15, 0.0  ;;  %v1514_v37 = vpop.f32.mrf.mxu0  ;;  %v1687_v32 = vpop.f32.mrf.mxu1 }
 0x2da   : > { %v1835_v38 = vmax.f32 %v1511_v33, 0.0  ;;  %v1821_v39 = vmax.f32 %v1684_v35, 0.0  ;;  %v1515_v42 = vadd.f32 %v1514_v37, %v3499_v40  ;;  %v1688_v55 = vadd.f32 %v1687_v32, %v3535_v61 }
 0x2db   : > { %v1880_v44 = vadd.f32 %v1879_v43, %v1834_v12  ;;  %v1950_v45 = vadd.f32 %v1949_v26, %v1820_v36  ;;  %v1516_v47 = vpop.f32.mrf.mxu0  ;;  %v1689_v58 = vpop.f32.mrf.mxu1  ;;  %v1088_v32 = vrot.slane %v1087_v23, 2 }
 0x2dc   : > { %v1917_v48 = vadd.f32 %v1916_v49, %v1835_v38  ;;  %v1987_v50 = vadd.f32 %v1986_v31, %v1821_v39  ;;  %v1838_v56 = vmax.f32 %v1515_v42, 0.0  ;;  %v1824_v62 = vmax.f32 %v1688_v55, 0.0 }
 0x2dd   : > { %v1517_v11 = vadd.f32 %v1516_v47, %v3501_v41  ;;  %v1690_v34 = vadd.f32 %v1689_v58, %v3540_v1  ;;  %v1518_v57 = vpop.f32.mrf.mxu0  ;;  %v1691_v59 = vpop.f32.mrf.mxu1  ;;  %v1124_v38 = vadd.f32 %v1123_v25, %v3733_v20 }
 0x2de   : > { %v1881_v54 = vadd.f32 %v1880_v44, %v1838_v56  ;;  %v1951_v0 = vadd.f32 %v1950_v45, %v1824_v62  ;;  %v1519_v3 = vadd.f32 %v1518_v57, %v3499_v40  ;;  %v1692_v6 = vadd.f32 %v1691_v59, %v3535_v61 }
 0x2df   : > { %v1839_v2 = vmax.f32 %v1517_v11, 0.0  ;;  %v1825_v7 = vmax.f32 %v1690_v34, 0.0  ;;  %v1520_v8 = vpop.f32.mrf.mxu0  ;;  %v1693_v9 = vpop.f32.mrf.mxu1  ;;  %v1089_v57 = vadd.f32 %v1088_v32, %v1087_v23  ;;  %v1197_v23 = vrot.slane %v3744_v53, 4 }
 0x2e0   : > { %v1842_v10 = vmax.f32 %v1519_v3, 0.0  ;;  %v1828_v13 = vmax.f32 %v1692_v6, 0.0  ;;  %v1521_v52 = vadd.f32 %v1520_v8, %v3501_v41  ;;  %v1694_v63 = vadd.f32 %v1693_v9, %v3540_v1 }
 0x2e1   : > { %v1918_v14 = vadd.f32 %v1917_v48, %v1839_v2  ;;  %v1988_v17 = vadd.f32 %v1987_v50, %v1825_v7  ;;  %v1524_v18 = vpop.f32.mrf.mxu0  ;;  %v1697_v19 = vpop.f32.mrf.mxu1  ;;  %v1160_v2 = vrot.slane %v3740_v51, 4 }
 0x2e2   : > { %v1882_v21 = vadd.f32 %v1881_v54, %v1842_v10  ;;  %v1952_v22 = vadd.f32 %v1951_v0, %v1828_v13  ;;  %v1843_v16 = vmax.f32 %v1521_v52, 0.0  ;;  %v1829_v24 = vmax.f32 %v1694_v63, 0.0 }
 0x2e3   : > { %v1525_v43 = vadd.f32 %v1524_v18, %v3499_v40  ;;  %v1698_v26 = vadd.f32 %v1697_v19, %v3535_v61  ;;  %v1526_v27 = vpop.f32.mrf.mxu0  ;;  %v1699_v60 = vpop.f32.mrf.mxu1  ;;  %v1125_v0 = vrot.slane %v1124_v38, 2  ;;  %v1090_v63 = vrot.slane %v1089_v57, 1 }
 0x2e4   : > { %v1919_v28 = vadd.f32 %v1918_v14, %v1843_v16  ;;  %v1989_v15 = vadd.f32 %v1988_v17, %v1829_v24  ;;  %v1527_v29 = vadd.f32 %v1526_v27, %v3501_v41  ;;  %v1700_v30 = vadd.f32 %v1699_v60, %v3540_v1 }
 0x2e5   : > { %v1846_v49 = vmax.f32 %v1525_v43, 0.0  ;;  %v1832_v31 = vmax.f32 %v1698_v26, 0.0  ;;  %v1528_v33 = vpop.f32.mrf.mxu0  ;;  %v1701_v35 = vpop.f32.mrf.mxu1  ;;  %v1126_v18 = vadd.f32 %v1125_v0, %v1124_v38  ;;  %v1161_v24 = vadd.f32 %v1160_v2, %v3740_v51 }
 0x2e6   : > { %v1847_v12 = vmax.f32 %v1527_v29, 0.0  ;;  %v1833_v4 = vmax.f32 %v1700_v30, 0.0  ;;  %v1529_v36 = vadd.f32 %v1528_v33, %v3499_v40  ;;  %v1702_v37 = vadd.f32 %v1701_v35, %v3535_v61 }
 0x2e7   : > { %v1883_v39 = vadd.f32 %v1882_v21, %v1846_v49  ;;  %v1953_v42 = vadd.f32 %v1952_v22, %v1832_v31  ;;  %v1530_v55 = vpop.f32.mrf.mxu0  ;;  %v1703_v44 = vpop.f32.mrf.mxu1  ;;  %v1127_v49 = vrot.slane %v1126_v18, 1  ;;  %v1198_v51 = vadd.f32 %v1197_v23, %v3744_v53 }
 0x2e8   : > { %v1920_v45 = vadd.f32 %v1919_v28, %v1847_v12  ;;  %v1990_v47 = vadd.f32 %v1989_v15, %v1833_v4  ;;  %v1850_v58 = vmax.f32 %v1529_v36, 0.0  ;;  %v1836_v48 = vmax.f32 %v1702_v37, 0.0 }
 0x2e9   : > { %v1531_v50 = vadd.f32 %v1530_v55, %v3501_v41  ;;  %v1704_v56 = vadd.f32 %v1703_v44, %v3540_v1  ;;  %v1707_v62 = vpop.f32.mrf.mxu1  ;;  %v1091_v15 = vadd.f32 %v1090_v63, %v1089_v57  ;;  %v1162_v4 = vrot.slane %v1161_v24, 2 }
 0x2ea   : > { %v1884_v11 = vadd.f32 %v1883_v39, %v1850_v58  ;;  %v1954_v40 = vadd.f32 %v1953_v42, %v1836_v48  ;;  %v1708_v34 = vadd.f32 %v1707_v62, %v3535_v61 }
 0x2eb   : > { %v1851_v59 = vmax.f32 %v1531_v50, 0.0  ;;  %v1837_v20 = vmax.f32 %v1704_v56, 0.0  ;;  %v1709_v54 = vpop.f32.mrf.mxu1 }
 0x2ec   : > { %v1885_v3 = vrot.slane %v1884_v11, 4  ;;  %v1840_v6 = vmax.f32 %v1708_v34, 0.0  ;;  %v1710_v5 = vadd.f32 %v1709_v54, %v3540_v1 }
 0x2ed   : > { %v1921_v7 = vadd.f32 %v1920_v45, %v1851_v59  ;;  %v1991_v41 = vadd.f32 %v1990_v47, %v1837_v20  ;;  %v1711_v8 = vpop.f32.mrf.mxu1  ;;  %v1128_v45 = vadd.f32 %v1127_v49, %v1126_v18  ;;  %v1203_v47 = vmul.f32 0.00390625, %v1091_v15  ;;  %v2936_v15 = vld [vmem:[#allocation10 + $0x28] sm:$0xff]   ;;  %v2939_v49 = vld [vmem:[#allocation10 + $0x10] sm:$0xff]  }
 0x2ee   : > { %v1886_v9 = vadd.f32 %v1885_v3, %v1884_v11  ;;  %v1955_v10 = vadd.f32 %v1954_v40, %v1840_v6  ;;  %v1841_v13 = vmax.f32 %v1710_v5, 0.0  ;;  %v1712_v52 = vadd.f32 %v1711_v8, %v3535_v61 }
 0x2ef   : > { %v1922_v14 = vrot.slane %v1921_v7, 4  ;;  %v1713_v17 = vpop.f32.mrf.mxu1  ;;  %v1199_v11 = vrot.slane %v1198_v51, 2  ;;  %v1204_v57 = vmul.f32 0.00390625, %v1128_v45  ;;  %v1163_v20 = vadd.f32 %v1162_v4, %v1161_v24 }
 0x2f0   : > { %v1887_v19 = vrot.slane %v1886_v9, 2  ;;  %v1992_v21 = vadd.f32 %v1991_v41, %v1841_v13  ;;  %v1844_v22 = vmax.f32 %v1712_v52, 0.0  ;;  %v1714_v16 = vadd.f32 %v1713_v17, %v3540_v1 }
 0x2f1   : > { %v1923_v25 = vadd.f32 %v1922_v14, %v1921_v7  ;;  %v1717_v43 = vpop.f32.mrf.mxu1  ;;  %v1200_v3 = vadd.f32 %v1199_v11, %v1198_v51  ;;  %v2934_v7 = vld [vmem:[#allocation10 + $0x38] sm:$0xff]  }
 0x2f2   : > { %v1888_v26 = vadd.f32 %v1887_v19, %v1886_v9  ;;  %v1956_v27 = vadd.f32 %v1955_v10, %v1844_v22  ;;  %v1845_v60 = vmax.f32 %v1714_v16, 0.0  ;;  %v1718_v28 = vadd.f32 %v1717_v43, %v3535_v61 }
 0x2f3   : > { %v1924_v29 = vrot.slane %v1923_v25, 2  ;;  %v1719_v30 = vpop.f32.mrf.mxu1  ;;  %v1201_v10 = vrot.slane %v1200_v3, 1 }
 0x2f4   : > { %v1889_v31 = vrot.slane %v1888_v26, 1  ;;  %v1993_v33 = vadd.f32 %v1992_v21, %v1845_v60  ;;  %v1848_v35 = vmax.f32 %v1718_v28, 0.0  ;;  %v1720_v12 = vadd.f32 %v1719_v30, %v3540_v1  ;;  %v2935_v28 = vld [vmem:[#allocation10 + $0x30] sm:$0xff]   ;;  %v2938_v30 = vld [vmem:[#allocation10 + $0x18] sm:$0xff]  }
 0x2f5   : > { %v1925_v36 = vadd.f32 %v1924_v29, %v1923_v25  ;;  %v1721_v37 = vpop.f32.mrf.mxu1  ;;  %v1202_v18 = vadd.f32 %v1201_v10, %v1200_v3  ;;  %v2937_v29 = vld [vmem:[#allocation10 + $0x20] sm:$0xff]  }
 0x2f6   : > { %v1890_v32 = vadd.f32 %v1889_v31, %v1888_v26  ;;  %v1957_v38 = vadd.f32 %v1956_v27, %v1848_v35  ;;  %v1849_v39 = vmax.f32 %v1720_v12, 0.0  ;;  %v1722_v42 = vadd.f32 %v1721_v37, %v3535_v61  ;;  %v2940_v31 = vld [vmem:[#allocation10 + $0x8] sm:$0xff]   ;;  %v2681_v37 = vld [vmem:[%s3943_s4] ss:$0 sm:$0xff] }
 0x2f7   : > { %v1926_v55 = vrot.slane %v1925_v36, 1  ;;  %v1723_v44 = vpop.f32.mrf.mxu1  ;;  %v1206_v25 = vmul.f32 0.00390625, %v1202_v18 }
 0x2f8   : > { %v2002_v58 = vmul.f32 0.00390625, %v1890_v32  ;;  %v1994_v48 = vadd.f32 %v1993_v33, %v1849_v39  ;;  %v1852_v50 = vmax.f32 %v1722_v42, 0.0  ;;  %v1724_v56 = vadd.f32 %v1723_v44, %v3540_v1  ;;  %v2941_v33 = vld [vmem:[#allocation10] sm:$0xff]  }
 0x2f9   : > { %v1927_v62 = vadd.f32 %v1926_v55, %v1925_v36  ;;  %v1164_v1 = vrot.slane %v1163_v20, 1 }
 0x2fa   : > { %v1958_v53 = vadd.f32 %v1957_v38, %v1852_v50  ;;  %v1853_v40 = vmax.f32 %v1724_v56, 0.0  ;;  %v2007_v34 = vsel %vm2006_vm2, %v1203_v47, %v2002_v58  ;;  %v2714_v58 = vld [vmem:[%s3945_s6] ss:$0 sm:$0xff] }
 0x2fb   : > { %v2003_v59 = vmul.f32 0.00390625, %v1927_v62  ;;  %v2011_v41 = vpack.c.bf16 %v2007_v34, %v2007_v34  ;;  %v1165_v63 = vadd.f32 %v1164_v1, %v1163_v20 }
 0x2fc   : > { %v1959_v61 = vrot.slane %v1958_v53, 4  ;;  %v1995_v54 = vadd.f32 %v1994_v48, %v1853_v40 }
 0x2fd   : > { %v2008_v0 = vsel %vm2006_vm2, %v1204_v57, %v2003_v59  ;;  %v1205_v22 = vmul.f32 0.00390625, %v1165_v63 }
 0x2fe   : > { %v1960_v6 = vadd.f32 %v1959_v61, %v1958_v53  ;;  %v1996_v5 = vrot.slane %v1995_v54, 4  ;;  %v2012_v2 = vpack.c.bf16 %v2008_v0, %v2008_v0 }
 0x300   : > { %v1961_v8 = vrot.slane %v1960_v6, 2  ;;  %v1997_v9 = vadd.f32 %v1996_v5, %v1995_v54  ;;  %2310 = vmatprep.mubr.bf16.mxu0 %v2012_v2 }
 0x301   : > { %2311 = vmatmul.mubr.bf16.vlgmr.msra.gmra.mxu0 %v2011_v41 }
 0x302   : > { %v1962_v13 = vadd.f32 %v1961_v8, %v1960_v6  ;;  %v1998_v52 = vrot.slane %v1997_v9, 2  ;;  %2783 = vmatpush3.bf16.msra.mxu0 %v2934_v7  ;;  %2798 = vmatprep.mubr.msk.bf16.mxu0 %vm3160_vm3, %v3159_v46 }
 0x303   : > { %2784 = vmatprep.subr.bf16.mxu0 %v3159_v46 }
 0x304   : > { %v1963_v14 = vrot.slane %v1962_v13, 1  ;;  %v1999_v17 = vadd.f32 %v1998_v52, %v1997_v9 }
 0x306   : > { %v1964_v19 = vadd.f32 %v1963_v14, %v1962_v13  ;;  %v2000_v21 = vrot.slane %v1999_v17, 1  ;;  %2785 = vmatpush3.bf16.msra.mxu0 %v2935_v28 }
 0x307   : > { %2786 = vmatprep.subr.bf16.mxu0 %v3159_v46 }
 0x308   : > { %v2004_v16 = vmul.f32 0.00390625, %v1964_v19  ;;  %v2001_v24 = vadd.f32 %v2000_v21, %v1999_v17 }
 0x30a   : > { %v2009_v23 = vsel %vm2006_vm2, %v1205_v22, %v2004_v16  ;;  %v2005_v43 = vmul.f32 0.00390625, %v2001_v24  ;;  %2787 = vmatpush3.bf16.msra.mxu0 %v2936_v15 }
 0x30b   : > { %v2013_v60 = vpack.c.bf16 %v2009_v23, %v2009_v23  ;;  %2788 = vmatprep.subr.bf16.mxu0 %v3159_v46 }
 0x30c   : > { %v2010_v26 = vsel %vm2006_vm2, %v1206_v25, %v2005_v43 }
 0x30d   : > { %v2014_v27 = vpack.c.bf16 %v2010_v26, %v2010_v26 }
 0x30e   : > { %2789 = vmatpush3.bf16.msra.mxu0 %v2937_v29 }
 0x30f   : > { %2350 = vmatprep.mubr.bf16.mxu1 %v2014_v27  ;;  %2790 = vmatprep.subr.bf16.mxu0 %v3159_v46 }
 0x310   : > { %2351 = vmatmul.mubr.bf16.vlgmr.msra.gmra.mxu1 %v2013_v60 }
 0x312   : > { %2791 = vmatpush3.bf16.msra.mxu0 %v2938_v30 }
 0x313   : > { %2792 = vmatprep.subr.bf16.mxu0 %v3159_v46 }
 0x316   : > { %2793 = vmatpush3.bf16.msra.mxu0 %v2939_v49 }
 0x317   : > { %2794 = vmatprep.subr.bf16.mxu0 %v3159_v46 }
 0x31a   : > { %2795 = vmatpush3.bf16.msra.mxu0 %v2940_v31 }
 0x31b   : > { %2796 = vmatprep.subr.bf16.mxu0 %v3159_v46 }
 0x31e   : > { %2797 = vmatpush3.bf16.msra.mxu0 %v2941_v33 }
 0x3c1   : > { %v2745_v35 = vpop.f32.mrf.mxu0 }
 0x3c3   : > { %v2746_v12 = vpop.f32.mrf.mxu0 }
 0x3c4   : > { %v2747_v36 = vadd.f32 %v2746_v12, %v2745_v35 }
 0x3c5   : > { %v2748_v4 = vpop.f32.mrf.mxu0 }
 0x3c6   : > { %v2313_v39 = vadd.f32 %v2747_v36, %v2681_v37 }
 0x3c7   : > { %v2749_v51 = vpop.f32.mrf.mxu0 }
 0x3d0   : > { %v2767_v32 = vpop.f32.mrf.mxu1 }
 0x3d2   : > { %v2768_v38 = vpop.f32.mrf.mxu1 }
 0x3d3   : > { %v2769_v42 = vadd.f32 %v2768_v38, %v2767_v32 }
 0x3d4   : > { %v2770_v55 = vpop.f32.mrf.mxu1 }
 0x3d5   : > { %v2353_v44 = vadd.f32 %v2769_v42, %v2313_v39 }
 0x3d6   : > { %v2771_v45 = vpop.f32.mrf.mxu1 }
 0x3d7   : > { %v2358_v46 = vmax.f32 %v2353_v44, 0.0 }
 0x3d9   : > { %v2359_v47 = vpack.c.bf16 %v2358_v46, %v2358_v46 }
 0x3db   : > { %2799 = vmatmul.mubr.bf16.vlgmr.msra.gmra.mxu0 %v2359_v47 }
 0x49b   : > { %v2465_v48 = vpop.f32.mrf.mxu0 }
 0x49c   : > { %v2466_v50 = vadd.f32 %v2714_v58, %v2465_v48 }
 0x49d   : > { %v2800_v56 = vpop.f32.mrf.mxu0 }
 0x49e   : > { %2471 = vst [vmem:[%s351_s10] sm:$0x3] %v2466_v50 }
 0x49f   : > { %v2468_v62 = vpop.f32.mrf.mxu0 }
 0x4a0   : > { %3087 = shalt.err (!%p3084_p13)
}
 0x4a1   : > { %s3088_s9 = scalar_lea.hbm %s3896_s21, 32  ;;  %s3092_s17 = scalar_lea.hbm %s3946_s7, 64 }
 0x4a2   : > { %p3089_p10 = scmp.ne.s32.totalorder %s3896_s21, %s3088_s9  ;;  %p3093_p11 = scmp.lt.s32.totalorder %s3896_s21, %s3946_s7 }
 0x4a3   : > { %p3094_p9 = scmp.lt.s32.totalorder %s3092_s17, %s3088_s9 }
 0x4a4   : > { %p3090_p4 = pnand %p3089_p10, %p3966_p2 }
 0x4a5   : > { %p3095_p1 = por %p3094_p9, %p3093_p11 }
 0x4a6   : > { %p3091_p0 = pneg %p3090_p4 }
 0x4a8   : > { %p3096_p12 = pnand %p3095_p1, %p3091_p0 }
 0x4aa   : > { %3099 = shalt.err (!%p3096_p12)
}
 0x4ab   : > { %2822 = dma.vmem_to_hbm [thread:$0]  (%p3966_p2), %s3898_s15, 32, %s3896_s21, %s2473_s1   ;;  %v2801_v11 = vpop.f32.mrf.mxu0 }
 0x4ac PF: > { %s2498_s10 = sand.u32 1, %s3134_s24   ;;  %p3967_p3 = scmp.ne.s32.totalorder %s3953_s8, 0 }
 0x4ad   : > { %p3968_p5 = scmp.ge.s32.totalorder %s3146_s27, 2  ;;  %s2499_s14 = scalar_lea.sflag [#allocation4], %s2498_s10 }
 0x4af   : > { %p2842_p6 = pnand %p3968_p5, %p3967_p3 }
 0x4b1   : > { %p2843_p8 = pneg %p2842_p6 }
 0x4b3   : > { %3129 = dma.done.wait (%p2843_p8), %s2499_s14, 32  }
 0x4b4   : > { %3131 = vsyncadd (%p2843_p8), %s2499_s14, 4294967264  ;;  %p22_p7 = scmp.ge.s32.totalorder %s3290_s16, 4   ;;  %s3969_s24 = smov %s3138_s25 }
 0x4b5   : > { %s3970_s25 = smov %s3142_s26  ;;  %s3971_s26 = smov %s3306_s29 }
 0x4b6   : > { %s3972_s27 = smov %s3290_s16  ;;  %24 = sbr.rel (!%p22_p7) target bundleno = 9 (0x9), region = 110 }
 0x4bb   :  { %2504 = vsyncpa [#allocation3], 1 }
 0x4bc   :  { %2506 = vsyncpa [#allocation3 + $0x1], 1 }
 0x4bd   :  { %2507 = vsyncpa [#allocation6], 1 }
 0x4be   :  { %2508 = vsyncpa [#allocation9], 1 }
 0x4bf   :  { %2509 = vsyncpa [#allocation4], 1 }
 0x4c0   :  { %2511 = vsyncpa [#allocation4 + $0x1], 1 }

</bundles_post_ra>
